<compile_context>
chip_gen: v7x
topology: tpu7x:2x2x1
jax: 0.10.0
libtpu: 0.0.40
codegen_flags: <defaults>
</compile_context>

<pallas_src>
import functools
import math

import jax
import jax.numpy as jnp
from jax.experimental import pallas as pl
from jax.experimental.pallas import tpu as pltpu

# -----------------------------------------------------------------------------
# Small synthetic BERT config (shapes consistent with BertModel + nn.Linear fc).
# -----------------------------------------------------------------------------
BATCH = 2
SEQ = 8
HIDDEN = 32
NUM_HEADS = 4
HEAD_DIM = HIDDEN // NUM_HEADS
INTERMEDIATE = 64
NUM_LAYERS = 2
VOCAB = 100
TYPE_VOCAB = 2
MAX_POS = 128
CLASSES = 2
LN_EPS = 1e-12

_VMEM = pl.BlockSpec(memory_space=pltpu.MemorySpace.VMEM)
_REFS_PER_LAYER = 12


# -----------------------------------------------------------------------------
# In-kernel helpers (pure functions on VMEM-resident values, f32 math)
# -----------------------------------------------------------------------------
def _layernorm(x, g, b):
    mean = jnp.mean(x, axis=-1, keepdims=True)
    xc = x - mean
    var = jnp.mean(xc * xc, axis=-1, keepdims=True)
    return xc * jax.lax.rsqrt(var + LN_EPS) * g + b


def _gelu(x):
    # TODO(synk): HF BERT uses erf-based gelu; tanh approximation used here for
    # guaranteed Mosaic lowering (max abs diff ~1e-3).
    c = jnp.float32(math.sqrt(2.0 / math.pi))
    return 0.5 * x * (1.0 + jnp.tanh(c * (x + 0.044715 * x * x * x)))


# -----------------------------------------------------------------------------
# Single fused kernel: embeddings LN -> N encoder layers -> pooler -> fc
# -----------------------------------------------------------------------------
def _bert_kernel(*refs):
    o_ref = refs[-1]
    it = iter(refs[:-1])
    (emb_ref, maskb_ref, hmask_ref, gsum_ref, rbig_ref,
     eg_ref, eb_ref) = (next(it) for _ in range(7))
    layers = [tuple(next(it) for _ in range(_REFS_PER_LAYER))
              for _ in range(NUM_LAYERS)]
    pool_w_ref, pool_b_ref, fc_w_ref, fc_b_ref = (next(it) for _ in range(4))

    f32, bf16 = jnp.float32, jnp.bfloat16
    m, h = emb_ref.shape                      # M = B*S, H
    b, _, nhs = maskb_ref.shape               # nhs = NUM_HEADS * S (head-major)
    s = nhs // NUM_HEADS

    # Embedding LayerNorm (no residual).
    x = _layernorm(emb_ref[...], eg_ref[...], eb_ref[...])        # (M, H) f32

    # Loop-invariant loads, hoisted once.
    mask_bias = maskb_ref[...]        # (B, 1, NH*S)  additive key mask, tiled per head
    hmask = hmask_ref[...]            # (NH*S, H)     1 where row-head == col-head
    gsum = gsum_ref[...]              # (NH*S, NH*S)  1 where same head group
    rbig = rbig_ref[...]              # (B*NH*S, M)   bf16 0/1 row-replication matrix

    for (qkv_w, qkv_b, ao_w, ao_b, a_g, a_beta,
         i_w, i_b, o_w, o_b, o_g, o_beta) in layers:
        # Fused Q/K/V projection; 1/sqrt(head_dim) pre-folded into Q columns.
        qkv = jnp.dot(x.astype(bf16), qkv_w[...],
                      preferred_element_type=f32) + qkv_b[...]    # (M, 3H) f32

        q3 = qkv[:, :h].reshape(b, s, h).astype(bf16)             # (B, S, H)
        k2 = qkv[:, h:2 * h].astype(bf16)                         # (M, H)
        v2 = qkv[:, 2 * h:].astype(bf16)                          # (M, H)

        # Head-major replication of K/V rows (row gather as one bf16 matmul,
        # exact since rbig is 0/1) + zero cross-head columns via hmask.
        k_bd = (jnp.dot(rbig, k2, preferred_element_type=f32)
                .reshape(b, nhs, h) * hmask).astype(bf16)         # (B, NH*S, H)
        v_bd = (jnp.dot(rbig, v2, preferred_element_type=f32)
                .reshape(b, nhs, h) * hmask).astype(bf16)         # (B, NH*S, H)

        # scores[b, q, head*S + j] = <q_head[b,q], k_head[b,j]>  (scale in q_w)
        sc = jnp.einsum("bqc,bnc->bqn", q3, k_bd,
                        preferred_element_type=f32)               # (B, S, NH*S)
        sc = sc + mask_bias                                       # bcast (B,1,NH*S)

        # One shared shift per (b, q) row is exact for the per-head softmax
        # (softmax is shift-invariant within each head group) and keeps exp<=1.
        sc = sc - jnp.max(sc, axis=-1, keepdims=True)
        p = jnp.exp(sc).reshape(m, nhs)                           # (M, NH*S) f32
        # Per-head-group denominators (sum + broadcast in one tiny f32 matmul).
        denom = jnp.dot(p, gsum, preferred_element_type=f32)      # (M, NH*S)
        p = (p * pl.reciprocal(denom, approx=True)
             ).reshape(b, s, nhs).astype(bf16)

        # Heads come out already merged along H (block-diagonal v_bd).
        ctx = jnp.einsum("bqn,bnc->bqc", p, v_bd,
                         preferred_element_type=f32)              # (B, S, H)
        # Single full-H attention output projection.
        attn = jnp.dot(ctx.reshape(m, h).astype(bf16), ao_w[...],
                       preferred_element_type=f32) + ao_b[...]
        x = _layernorm(attn + x, a_g[...], a_beta[...])

        inter = _gelu(jnp.dot(x.astype(bf16), i_w[...],
                              preferred_element_type=f32) + i_b[...])
        ff = jnp.dot(inter.astype(bf16), o_w[...],
                     preferred_element_type=f32) + o_b[...]
        x = _layernorm(ff + x, o_g[...], o_beta[...])

    # Pooler + classifier on ALL rows (trivial at toy shapes); the [CLS] rows
    # are selected outside the kernel.
    # TODO(synk): at real sizes run the pooler only on the CLS tile.
    pooled = jnp.tanh(jnp.dot(x.astype(bf16), pool_w_ref[...],
                              preferred_element_type=f32) + pool_b_ref[...])
    logits = jnp.dot(pooled.astype(bf16), fc_w_ref[...],
                     preferred_element_type=f32) + fc_b_ref[...]
    o_ref[...] = logits.astype(o_ref.dtype)


# -----------------------------------------------------------------------------
# Parameter initialization (deterministic, init-style: normal(0, 0.02))
# -----------------------------------------------------------------------------
def init_params(key):
    def norm(k, shape):
        return 0.02 * jax.random.normal(k, shape, dtype=jnp.float32)

    keys = iter(jax.random.split(key, 8 + NUM_LAYERS * 8))
    params = {
        "word_emb": norm(next(keys), (VOCAB, HIDDEN)),
        "pos_emb": norm(next(keys), (MAX_POS, HIDDEN)),
        "type_emb": norm(next(keys), (TYPE_VOCAB, HIDDEN)),
        "emb_ln_g": jnp.ones((HIDDEN,), jnp.float32),
        "emb_ln_b": jnp.zeros((HIDDEN,), jnp.float32),
        "pool_w": norm(next(keys), (HIDDEN, HIDDEN)),
        "pool_b": jnp.zeros((HIDDEN,), jnp.float32),
        "fc_w": norm(next(keys), (HIDDEN, CLASSES)),
        "fc_b": jnp.zeros((CLASSES,), jnp.float32),
        "layers": [],
    }
    for _ in range(NUM_LAYERS):
        layer = {
            "q_w": norm(next(keys), (HIDDEN, HIDDEN)),
            "q_b": jnp.zeros((HIDDEN,), jnp.float32),
            "k_w": norm(next(keys), (HIDDEN, HIDDEN)),
            "k_b": jnp.zeros((HIDDEN,), jnp.float32),
            "v_w": norm(next(keys), (HIDDEN, HIDDEN)),
            "v_b": jnp.zeros((HIDDEN,), jnp.float32),
            "ao_w": norm(next(keys), (HIDDEN, HIDDEN)),
            "ao_b": jnp.zeros((HIDDEN,), jnp.float32),
            "ao_ln_g": jnp.ones((HIDDEN,), jnp.float32),
            "ao_ln_b": jnp.zeros((HIDDEN,), jnp.float32),
            "i_w": norm(next(keys), (HIDDEN, INTERMEDIATE)),
            "i_b": jnp.zeros((INTERMEDIATE,), jnp.float32),
            "o_w": norm(next(keys), (INTERMEDIATE, HIDDEN)),
            "o_b": jnp.zeros((HIDDEN,), jnp.float32),
            "o_ln_g": jnp.ones((HIDDEN,), jnp.float32),
            "o_ln_b": jnp.zeros((HIDDEN,), jnp.float32),
        }
        params["layers"].append(layer)
    return params


def pack_params(params):
    """One-time param prep: fuse QKV (scale folded into Q), cast matmul
    weights to bf16, reshape biases / LN params to (1, N) f32 rows."""
    f32, bf16 = jnp.float32, jnp.bfloat16
    scale = 1.0 / math.sqrt(HEAD_DIM)

    def row(v):
        return jnp.asarray(v, f32).reshape(1, -1)

    ops = [row(params["emb_ln_g"]), row(params["emb_ln_b"])]
    for p in params["layers"]:
        qkv_w = jnp.concatenate([p["q_w"] * scale, p["k_w"], p["v_w"]], axis=1)
        qkv_b = jnp.concatenate([p["q_b"] * scale, p["k_b"], p["v_b"]])
        ops += [
            qkv_w.astype(bf16), row(qkv_b),
            p["ao_w"].astype(bf16), row(p["ao_b"]),
            row(p["ao_ln_g"]), row(p["ao_ln_b"]),
            p["i_w"].astype(bf16), row(p["i_b"]),
            p["o_w"].astype(bf16), row(p["o_b"]),
            row(p["o_ln_g"]), row(p["o_ln_b"]),
        ]
    ops += [params["pool_w"].astype(bf16), row(params["pool_b"]),
            params["fc_w"].astype(bf16), row(params["fc_b"])]
    return tuple(ops)


# -----------------------------------------------------------------------------
# Forward pass (mirrors Bert.forward: BertModel -> pooled output -> fc logits)
# -----------------------------------------------------------------------------
@jax.jit
def bert_forward(packed_ops, word_emb, pos_emb, type_emb,
                 input_ids, attention_mask, token_type_ids):
    batch, seq = input_ids.shape
    nhs = NUM_HEADS * seq

    # Embedding gathers stay in plain JAX glue (data-dependent gather).
    emb = (jnp.take(word_emb, input_ids, axis=0)
           + pos_emb[None, :seq, :]
           + jnp.take(type_emb, token_type_ids, axis=0)).astype(jnp.float32)
    emb2d = emb.reshape(batch * seq, HIDDEN)

    # Additive attention-mask bias, tiled head-major to [B, 1, NH*S]; the
    # broadcast over the query axis happens inside the kernel.
    mask_bias = ((1.0 - attention_mask.astype(jnp.float32)) * -10000.0
                 ).reshape(batch, 1, seq)
    mask_tiled = jnp.tile(mask_bias, (1, 1, NUM_HEADS))            # (B,1,NH*S)

    # Tiny precomputed 0/1 structure matrices for the head-major attention:
    #   hmask[n, c] = 1 iff key-row n's head == hidden-column c's head
    #   gsum[n, m]  = 1 iff rows n, m belong to the same head group
    #   rbig[r, rr] = 1 iff replicated row r (= (batch, head, key)) picks
    #                 source row rr (= (batch, key))
    n_idx = jnp.arange(nhs)
    c_idx = jnp.arange(HIDDEN)
    m_idx = jnp.arange(batch * seq)
    r_idx = jnp.arange(batch * nhs)
    hmask = (n_idx[:, None] // seq == c_idx[None, :] // HEAD_DIM
             ).astype(jnp.float32)                                 # (NH*S, H)
    gsum = (n_idx[:, None] // seq == n_idx[None, :] // seq
            ).astype(jnp.float32)                                  # (NH*S, NH*S)
    rbig = ((r_idx[:, None] // nhs == m_idx[None, :] // seq)
            & (r_idx[:, None] % seq == m_idx[None, :] % seq)
            ).astype(jnp.bfloat16)                                 # (B*NH*S, M)

    n_in = 5 + len(packed_ops)
    # Whole model in one grid-less pallas_call: every intermediate stays in
    # VMEM/vregs.  TODO(synk): real sizes need a layer-streamed, M-tiled grid
    # with 'parallel' dimension_semantics (v7x megacore) + vmem_limit_bytes.
    out2d = pl.pallas_call(
        _bert_kernel,
        out_shape=jax.ShapeDtypeStruct((batch * seq, CLASSES), jnp.float32),
        in_specs=[_VMEM] * n_in,
        out_specs=_VMEM,
    )(emb2d, mask_tiled, hmask, gsum, rbig, *packed_ops)

    # [CLS] rows (positions b*seq) selected in JAX glue.
    return out2d.reshape(batch, seq, CLASSES)[:, 0, :]


# -----------------------------------------------------------------------------
if __name__ == "__main__":
    key = jax.random.PRNGKey(0)
    k_param, k_ids, k_types = jax.random.split(key, 3)

    params = init_params(k_param)
    packed = pack_params(params)

    input_ids = jax.random.randint(k_ids, (BATCH, SEQ), 0, VOCAB, dtype=jnp.int32)
    token_type_ids = jax.random.randint(k_types, (BATCH, SEQ), 0, TYPE_VOCAB,
                                        dtype=jnp.int32)
    attention_mask = jnp.ones((BATCH, SEQ), dtype=jnp.int32)
    # make the mask non-trivial: pad out the last two tokens of sample 1
    attention_mask = attention_mask.at[1, -2:].set(0)

    logits = bert_forward(packed, params["word_emb"], params["pos_emb"],
                          params["type_emb"], input_ids, attention_mask,
                          token_type_ids)
    logits = jax.block_until_ready(logits)

    assert logits.shape == (BATCH, CLASSES)
    assert bool(jnp.all(jnp.isfinite(logits)))
    print("KERNEL_OK")
</pallas_src>

<mosaic_0001>
module attributes {stable_mosaic.version = 11 : i64} {
  func.func @_bert_kernel(%arg0: memref<16x32xf32, #tpu.memory_space<vmem>>, %arg1: memref<2x1x32xf32, #tpu.memory_space<vmem>>, %arg2: memref<32x32xf32, #tpu.memory_space<vmem>>, %arg3: memref<32x32xf32, #tpu.memory_space<vmem>>, %arg4: memref<64x16xbf16, #tpu.memory_space<vmem>>, %arg5: memref<1x32xf32, #tpu.memory_space<vmem>>, %arg6: memref<1x32xf32, #tpu.memory_space<vmem>>, %arg7: memref<32x96xbf16, #tpu.memory_space<vmem>>, %arg8: memref<1x96xf32, #tpu.memory_space<vmem>>, %arg9: memref<32x32xbf16, #tpu.memory_space<vmem>>, %arg10: memref<1x32xf32, #tpu.memory_space<vmem>>, %arg11: memref<1x32xf32, #tpu.memory_space<vmem>>, %arg12: memref<1x32xf32, #tpu.memory_space<vmem>>, %arg13: memref<32x64xbf16, #tpu.memory_space<vmem>>, %arg14: memref<1x64xf32, #tpu.memory_space<vmem>>, %arg15: memref<64x32xbf16, #tpu.memory_space<vmem>>, %arg16: memref<1x32xf32, #tpu.memory_space<vmem>>, %arg17: memref<1x32xf32, #tpu.memory_space<vmem>>, %arg18: memref<1x32xf32, #tpu.memory_space<vmem>>, %arg19: memref<32x96xbf16, #tpu.memory_space<vmem>>, %arg20: memref<1x96xf32, #tpu.memory_space<vmem>>, %arg21: memref<32x32xbf16, #tpu.memory_space<vmem>>, %arg22: memref<1x32xf32, #tpu.memory_space<vmem>>, %arg23: memref<1x32xf32, #tpu.memory_space<vmem>>, %arg24: memref<1x32xf32, #tpu.memory_space<vmem>>, %arg25: memref<32x64xbf16, #tpu.memory_space<vmem>>, %arg26: memref<1x64xf32, #tpu.memory_space<vmem>>, %arg27: memref<64x32xbf16, #tpu.memory_space<vmem>>, %arg28: memref<1x32xf32, #tpu.memory_space<vmem>>, %arg29: memref<1x32xf32, #tpu.memory_space<vmem>>, %arg30: memref<1x32xf32, #tpu.memory_space<vmem>>, %arg31: memref<32x32xbf16, #tpu.memory_space<vmem>>, %arg32: memref<1x32xf32, #tpu.memory_space<vmem>>, %arg33: memref<32x2xbf16, #tpu.memory_space<vmem>>, %arg34: memref<1x2xf32, #tpu.memory_space<vmem>>, %arg35: memref<16x2xf32, #tpu.memory_space<vmem>>) attributes {dimension_semantics = [], scalar_prefetch = 0 : i64, scratch_operands = 0 : i64, tpu.core_type = #tpu.core_type<tc>} {
    %c0 = arith.constant 0 : index
    %c0_0 = arith.constant 0 : index
    %0 = vector.load %arg0[%c0, %c0_0] : memref<16x32xf32, #tpu.memory_space<vmem>>, vector<16x32xf32>
    %c0_1 = arith.constant 0 : index
    %c0_2 = arith.constant 0 : index
    %1 = vector.load %arg5[%c0_1, %c0_2] : memref<1x32xf32, #tpu.memory_space<vmem>>, vector<1x32xf32>
    %c0_3 = arith.constant 0 : index
    %c0_4 = arith.constant 0 : index
    %2 = vector.load %arg6[%c0_3, %c0_4] : memref<1x32xf32, #tpu.memory_space<vmem>>, vector<1x32xf32>
    %cst = arith.constant dense<0.000000e+00> : vector<16xf32>
    %3 = vector.multi_reduction <add>, %0, %cst [1] : vector<16x32xf32> to vector<16xf32>
    %4 = vector.shape_cast %3 : vector<16xf32> to vector<16x1xf32>
    %cst_5 = arith.constant 3.200000e+01 : f32
    %5 = vector.broadcast %cst_5 : f32 to vector<16x1xf32>
    %6 = arith.divf %4, %5 : vector<16x1xf32>
    %7 = vector.broadcast %6 : vector<16x1xf32> to vector<16x32xf32>
    %8 = arith.subf %0, %7 : vector<16x32xf32>
    %9 = arith.mulf %8, %8 : vector<16x32xf32>
    %cst_6 = arith.constant dense<0.000000e+00> : vector<16xf32>
    %10 = vector.multi_reduction <add>, %9, %cst_6 [1] : vector<16x32xf32> to vector<16xf32>
    %11 = vector.shape_cast %10 : vector<16xf32> to vector<16x1xf32>
    %cst_7 = arith.constant 3.200000e+01 : f32
    %12 = vector.broadcast %cst_7 : f32 to vector<16x1xf32>
    %13 = arith.divf %11, %12 : vector<16x1xf32>
    %cst_8 = arith.constant 9.99999996E-13 : f32
    %14 = vector.broadcast %cst_8 : f32 to vector<16x1xf32>
    %15 = arith.addf %13, %14 : vector<16x1xf32>
    %16 = math.rsqrt %15 : vector<16x1xf32>
    %17 = vector.broadcast %16 : vector<16x1xf32> to vector<16x32xf32>
    %18 = arith.mulf %8, %17 : vector<16x32xf32>
    %19 = vector.broadcast %1 : vector<1x32xf32> to vector<16x32xf32>
    %20 = arith.mulf %18, %19 : vector<16x32xf32>
    %21 = vector.broadcast %2 : vector<1x32xf32> to vector<16x32xf32>
    %22 = arith.addf %20, %21 : vector<16x32xf32>
    %c0_9 = arith.constant 0 : index
    %c0_10 = arith.constant 0 : index
    %c0_11 = arith.constant 0 : index
    %23 = vector.load %arg1[%c0_9, %c0_10, %c0_11] : memref<2x1x32xf32, #tpu.memory_space<vmem>>, vector<2x1x32xf32>
    %c0_12 = arith.constant 0 : index
    %c0_13 = arith.constant 0 : index
    %24 = vector.load %arg2[%c0_12, %c0_13] : memref<32x32xf32, #tpu.memory_space<vmem>>, vector<32x32xf32>
    %c0_14 = arith.constant 0 : index
    %c0_15 = arith.constant 0 : index
    %25 = vector.load %arg3[%c0_14, %c0_15] : memref<32x32xf32, #tpu.memory_space<vmem>>, vector<32x32xf32>
    %c0_16 = arith.constant 0 : index
    %c0_17 = arith.constant 0 : index
    %26 = vector.load %arg4[%c0_16, %c0_17] : memref<64x16xbf16, #tpu.memory_space<vmem>>, vector<64x16xbf16>
    %27 = arith.truncf %22 : vector<16x32xf32> to vector<16x32xbf16>
    %c0_18 = arith.constant 0 : index
    %c0_19 = arith.constant 0 : index
    %28 = vector.load %arg7[%c0_18, %c0_19] : memref<32x96xbf16, #tpu.memory_space<vmem>>, vector<32x96xbf16>
    %cst_20 = arith.constant dense<0.000000e+00> : vector<16x96xf32>
    %29 = tpu.matmul %27, %28, %cst_20 {dimension_numbers = #tpu.dot_dimension_numbers<[1], [0], [0], [1], [0, 0, 1, 1], [], []>} : vector<16x32xbf16>, vector<32x96xbf16>, vector<16x96xf32> -> vector<16x96xf32>
    %c0_21 = arith.constant 0 : index
    %c0_22 = arith.constant 0 : index
    %30 = vector.load %arg8[%c0_21, %c0_22] : memref<1x96xf32, #tpu.memory_space<vmem>>, vector<1x96xf32>
    %31 = vector.broadcast %30 : vector<1x96xf32> to vector<16x96xf32>
    %32 = arith.addf %29, %31 : vector<16x96xf32>
    %33 = vector.extract_strided_slice %32 {offsets = [0, 0], sizes = [16, 32], strides = [1, 1]} : vector<16x96xf32> to vector<16x32xf32>
    %34 = vector.shape_cast %33 : vector<16x32xf32> to vector<2x8x32xf32>
    %35 = arith.truncf %34 : vector<2x8x32xf32> to vector<2x8x32xbf16>
    %36 = vector.extract_strided_slice %32 {offsets = [0, 32], sizes = [16, 32], strides = [1, 1]} : vector<16x96xf32> to vector<16x32xf32>
    %37 = arith.truncf %36 : vector<16x32xf32> to vector<16x32xbf16>
    %38 = vector.extract_strided_slice %32 {offsets = [0, 64], sizes = [16, 32], strides = [1, 1]} : vector<16x96xf32> to vector<16x32xf32>
    %39 = arith.truncf %38 : vector<16x32xf32> to vector<16x32xbf16>
    %cst_23 = arith.constant dense<0.000000e+00> : vector<64x32xf32>
    %40 = tpu.matmul %26, %37, %cst_23 {dimension_numbers = #tpu.dot_dimension_numbers<[1], [0], [0], [1], [0, 0, 1, 1], [], []>} : vector<64x16xbf16>, vector<16x32xbf16>, vector<64x32xf32> -> vector<64x32xf32>
    %41 = vector.shape_cast %40 : vector<64x32xf32> to vector<2x32x32xf32>
    %42 = vector.shape_cast %24 : vector<32x32xf32> to vector<1x32x32xf32>
    %43 = vector.broadcast %42 : vector<1x32x32xf32> to vector<2x32x32xf32>
    %44 = arith.mulf %41, %43 : vector<2x32x32xf32>
    %45 = arith.truncf %44 : vector<2x32x32xf32> to vector<2x32x32xbf16>
    %cst_24 = arith.constant dense<0.000000e+00> : vector<64x32xf32>
    %46 = tpu.matmul %26, %39, %cst_24 {dimension_numbers = #tpu.dot_dimension_numbers<[1], [0], [0], [1], [0, 0, 1, 1], [], []>} : vector<64x16xbf16>, vector<16x32xbf16>, vector<64x32xf32> -> vector<64x32xf32>
    %47 = vector.shape_cast %46 : vector<64x32xf32> to vector<2x32x32xf32>
    %48 = vector.shape_cast %24 : vector<32x32xf32> to vector<1x32x32xf32>
    %49 = vector.broadcast %48 : vector<1x32x32xf32> to vector<2x32x32xf32>
    %50 = arith.mulf %47, %49 : vector<2x32x32xf32>
    %51 = arith.truncf %50 : vector<2x32x32xf32> to vector<2x32x32xbf16>
    "tpu.trace_start"() <{level = 10 : i32, message = "bqc,bnc->bqn"}> : () -> ()
    %cst_25 = arith.constant dense<0.000000e+00> : vector<2x8x32xf32>
    %52 = tpu.matmul %35, %45, %cst_25 {dimension_numbers = #tpu.dot_dimension_numbers<[2], [2], [1], [1], [0, 0, 0, 1, 1, 1], [0], [0]>} : vector<2x8x32xbf16>, vector<2x32x32xbf16>, vector<2x8x32xf32> -> vector<2x8x32xf32>
    "tpu.trace_stop"() : () -> ()
    %53 = vector.broadcast %23 : vector<2x1x32xf32> to vector<2x8x32xf32>
    %54 = arith.addf %52, %53 : vector<2x8x32xf32>
    %cst_26 = arith.constant dense<0xFF800000> : vector<2x8xf32>
    %55 = vector.multi_reduction <maximumf>, %54, %cst_26 [2] : vector<2x8x32xf32> to vector<2x8xf32>
    %56 = vector.shape_cast %55 : vector<2x8xf32> to vector<2x8x1xf32>
    %57 = vector.broadcast %56 : vector<2x8x1xf32> to vector<2x8x32xf32>
    %58 = arith.subf %54, %57 : vector<2x8x32xf32>
    %59 = math.exp %58 : vector<2x8x32xf32>
    %60 = vector.shape_cast %59 : vector<2x8x32xf32> to vector<16x32xf32>
    %cst_27 = arith.constant dense<0.000000e+00> : vector<16x32xf32>
    %61 = tpu.matmul %60, %25, %cst_27 {dimension_numbers = #tpu.dot_dimension_numbers<[1], [0], [0], [1], [0, 0, 1, 1], [], []>} : vector<16x32xf32>, vector<32x32xf32>, vector<16x32xf32> -> vector<16x32xf32>
    %62 = tpu.reciprocal %61 {approx = true} : vector<16x32xf32> -> vector<16x32xf32>
    %63 = arith.mulf %60, %62 : vector<16x32xf32>
    %64 = vector.shape_cast %63 : vector<16x32xf32> to vector<2x8x32xf32>
    %65 = arith.truncf %64 : vector<2x8x32xf32> to vector<2x8x32xbf16>
    "tpu.trace_start"() <{level = 10 : i32, message = "bqn,bnc->bqc"}> : () -> ()
    %cst_28 = arith.constant dense<0.000000e+00> : vector<2x8x32xf32>
    %66 = tpu.matmul %65, %51, %cst_28 {dimension_numbers = #tpu.dot_dimension_numbers<[2], [1], [1], [2], [0, 0, 0, 1, 1, 2], [0], [0]>} : vector<2x8x32xbf16>, vector<2x32x32xbf16>, vector<2x8x32xf32> -> vector<2x8x32xf32>
    "tpu.trace_stop"() : () -> ()
    %67 = vector.shape_cast %66 : vector<2x8x32xf32> to vector<16x32xf32>
    %68 = arith.truncf %67 : vector<16x32xf32> to vector<16x32xbf16>
    %c0_29 = arith.constant 0 : index
    %c0_30 = arith.constant 0 : index
    %69 = vector.load %arg9[%c0_29, %c0_30] : memref<32x32xbf16, #tpu.memory_space<vmem>>, vector<32x32xbf16>
    %cst_31 = arith.constant dense<0.000000e+00> : vector<16x32xf32>
    %70 = tpu.matmul %68, %69, %cst_31 {dimension_numbers = #tpu.dot_dimension_numbers<[1], [0], [0], [1], [0, 0, 1, 1], [], []>} : vector<16x32xbf16>, vector<32x32xbf16>, vector<16x32xf32> -> vector<16x32xf32>
    %c0_32 = arith.constant 0 : index
    %c0_33 = arith.constant 0 : index
    %71 = vector.load %arg10[%c0_32, %c0_33] : memref<1x32xf32, #tpu.memory_space<vmem>>, vector<1x32xf32>
    %72 = vector.broadcast %71 : vector<1x32xf32> to vector<16x32xf32>
    %73 = arith.addf %70, %72 : vector<16x32xf32>
    %74 = arith.addf %73, %22 : vector<16x32xf32>
    %c0_34 = arith.constant 0 : index
    %c0_35 = arith.constant 0 : index
    %75 = vector.load %arg11[%c0_34, %c0_35] : memref<1x32xf32, #tpu.memory_space<vmem>>, vector<1x32xf32>
    %c0_36 = arith.constant 0 : index
    %c0_37 = arith.constant 0 : index
    %76 = vector.load %arg12[%c0_36, %c0_37] : memref<1x32xf32, #tpu.memory_space<vmem>>, vector<1x32xf32>
    %cst_38 = arith.constant dense<0.000000e+00> : vector<16xf32>
    %77 = vector.multi_reduction <add>, %74, %cst_38 [1] : vector<16x32xf32> to vector<16xf32>
    %78 = vector.shape_cast %77 : vector<16xf32> to vector<16x1xf32>
    %cst_39 = arith.constant 3.200000e+01 : f32
    %79 = vector.broadcast %cst_39 : f32 to vector<16x1xf32>
    %80 = arith.divf %78, %79 : vector<16x1xf32>
    %81 = vector.broadcast %80 : vector<16x1xf32> to vector<16x32xf32>
    %82 = arith.subf %74, %81 : vector<16x32xf32>
    %83 = arith.mulf %82, %82 : vector<16x32xf32>
    %cst_40 = arith.constant dense<0.000000e+00> : vector<16xf32>
    %84 = vector.multi_reduction <add>, %83, %cst_40 [1] : vector<16x32xf32> to vector<16xf32>
    %85 = vector.shape_cast %84 : vector<16xf32> to vector<16x1xf32>
    %cst_41 = arith.constant 3.200000e+01 : f32
    %86 = vector.broadcast %cst_41 : f32 to vector<16x1xf32>
    %87 = arith.divf %85, %86 : vector<16x1xf32>
    %cst_42 = arith.constant 9.99999996E-13 : f32
    %88 = vector.broadcast %cst_42 : f32 to vector<16x1xf32>
    %89 = arith.addf %87, %88 : vector<16x1xf32>
    %90 = math.rsqrt %89 : vector<16x1xf32>
    %91 = vector.broadcast %90 : vector<16x1xf32> to vector<16x32xf32>
    %92 = arith.mulf %82, %91 : vector<16x32xf32>
    %93 = vector.broadcast %75 : vector<1x32xf32> to vector<16x32xf32>
    %94 = arith.mulf %92, %93 : vector<16x32xf32>
    %95 = vector.broadcast %76 : vector<1x32xf32> to vector<16x32xf32>
    %96 = arith.addf %94, %95 : vector<16x32xf32>
    %97 = arith.truncf %96 : vector<16x32xf32> to vector<16x32xbf16>
    %c0_43 = arith.constant 0 : index
    %c0_44 = arith.constant 0 : index
    %98 = vector.load %arg13[%c0_43, %c0_44] : memref<32x64xbf16, #tpu.memory_space<vmem>>, vector<32x64xbf16>
    %cst_45 = arith.constant dense<0.000000e+00> : vector<16x64xf32>
    %99 = tpu.matmul %97, %98, %cst_45 {dimension_numbers = #tpu.dot_dimension_numbers<[1], [0], [0], [1], [0, 0, 1, 1], [], []>} : vector<16x32xbf16>, vector<32x64xbf16>, vector<16x64xf32> -> vector<16x64xf32>
    %c0_46 = arith.constant 0 : index
    %c0_47 = arith.constant 0 : index
    %100 = vector.load %arg14[%c0_46, %c0_47] : memref<1x64xf32, #tpu.memory_space<vmem>>, vector<1x64xf32>
    %101 = vector.broadcast %100 : vector<1x64xf32> to vector<16x64xf32>
    %102 = arith.addf %99, %101 : vector<16x64xf32>
    %cst_48 = arith.constant 5.000000e-01 : f32
    %103 = vector.broadcast %cst_48 : f32 to vector<16x64xf32>
    %104 = arith.mulf %103, %102 : vector<16x64xf32>
    %cst_49 = arith.constant 4.471500e-02 : f32
    %105 = vector.broadcast %cst_49 : f32 to vector<16x64xf32>
    %106 = arith.mulf %105, %102 : vector<16x64xf32>
    %107 = arith.mulf %106, %102 : vector<16x64xf32>
    %108 = arith.mulf %107, %102 : vector<16x64xf32>
    %109 = arith.addf %102, %108 : vector<16x64xf32>
    %cst_50 = arith.constant 0.797884583 : f32
    %110 = vector.broadcast %cst_50 : f32 to vector<16x64xf32>
    %111 = arith.mulf %110, %109 : vector<16x64xf32>
    %112 = math.tanh %111 : vector<16x64xf32>
    %cst_51 = arith.constant 1.000000e+00 : f32
    %113 = vector.broadcast %cst_51 : f32 to vector<16x64xf32>
    %114 = arith.addf %113, %112 : vector<16x64xf32>
    %115 = arith.mulf %104, %114 : vector<16x64xf32>
    %116 = arith.truncf %115 : vector<16x64xf32> to vector<16x64xbf16>
    %c0_52 = arith.constant 0 : index
    %c0_53 = arith.constant 0 : index
    %117 = vector.load %arg15[%c0_52, %c0_53] : memref<64x32xbf16, #tpu.memory_space<vmem>>, vector<64x32xbf16>
    %cst_54 = arith.constant dense<0.000000e+00> : vector<16x32xf32>
    %118 = tpu.matmul %116, %117, %cst_54 {dimension_numbers = #tpu.dot_dimension_numbers<[1], [0], [0], [1], [0, 0, 1, 1], [], []>} : vector<16x64xbf16>, vector<64x32xbf16>, vector<16x32xf32> -> vector<16x32xf32>
    %c0_55 = arith.constant 0 : index
    %c0_56 = arith.constant 0 : index
    %119 = vector.load %arg16[%c0_55, %c0_56] : memref<1x32xf32, #tpu.memory_space<vmem>>, vector<1x32xf32>
    %120 = vector.broadcast %119 : vector<1x32xf32> to vector<16x32xf32>
    %121 = arith.addf %118, %120 : vector<16x32xf32>
    %122 = arith.addf %121, %96 : vector<16x32xf32>
    %c0_57 = arith.constant 0 : index
    %c0_58 = arith.constant 0 : index
    %123 = vector.load %arg17[%c0_57, %c0_58] : memref<1x32xf32, #tpu.memory_space<vmem>>, vector<1x32xf32>
    %c0_59 = arith.constant 0 : index
    %c0_60 = arith.constant 0 : index
    %124 = vector.load %arg18[%c0_59, %c0_60] : memref<1x32xf32, #tpu.memory_space<vmem>>, vector<1x32xf32>
    %cst_61 = arith.constant dense<0.000000e+00> : vector<16xf32>
    %125 = vector.multi_reduction <add>, %122, %cst_61 [1] : vector<16x32xf32> to vector<16xf32>
    %126 = vector.shape_cast %125 : vector<16xf32> to vector<16x1xf32>
    %cst_62 = arith.constant 3.200000e+01 : f32
    %127 = vector.broadcast %cst_62 : f32 to vector<16x1xf32>
    %128 = arith.divf %126, %127 : vector<16x1xf32>
    %129 = vector.broadcast %128 : vector<16x1xf32> to vector<16x32xf32>
    %130 = arith.subf %122, %129 : vector<16x32xf32>
    %131 = arith.mulf %130, %130 : vector<16x32xf32>
    %cst_63 = arith.constant dense<0.000000e+00> : vector<16xf32>
    %132 = vector.multi_reduction <add>, %131, %cst_63 [1] : vector<16x32xf32> to vector<16xf32>
    %133 = vector.shape_cast %132 : vector<16xf32> to vector<16x1xf32>
    %cst_64 = arith.constant 3.200000e+01 : f32
    %134 = vector.broadcast %cst_64 : f32 to vector<16x1xf32>
    %135 = arith.divf %133, %134 : vector<16x1xf32>
    %cst_65 = arith.constant 9.99999996E-13 : f32
    %136 = vector.broadcast %cst_65 : f32 to vector<16x1xf32>
    %137 = arith.addf %135, %136 : vector<16x1xf32>
    %138 = math.rsqrt %137 : vector<16x1xf32>
    %139 = vector.broadcast %138 : vector<16x1xf32> to vector<16x32xf32>
    %140 = arith.mulf %130, %139 : vector<16x32xf32>
    %141 = vector.broadcast %123 : vector<1x32xf32> to vector<16x32xf32>
    %142 = arith.mulf %140, %141 : vector<16x32xf32>
    %143 = vector.broadcast %124 : vector<1x32xf32> to vector<16x32xf32>
    %144 = arith.addf %142, %143 : vector<16x32xf32>
    %145 = arith.truncf %144 : vector<16x32xf32> to vector<16x32xbf16>
    %c0_66 = arith.constant 0 : index
    %c0_67 = arith.constant 0 : index
    %146 = vector.load %arg19[%c0_66, %c0_67] : memref<32x96xbf16, #tpu.memory_space<vmem>>, vector<32x96xbf16>
    %cst_68 = arith.constant dense<0.000000e+00> : vector<16x96xf32>
    %147 = tpu.matmul %145, %146, %cst_68 {dimension_numbers = #tpu.dot_dimension_numbers<[1], [0], [0], [1], [0, 0, 1, 1], [], []>} : vector<16x32xbf16>, vector<32x96xbf16>, vector<16x96xf32> -> vector<16x96xf32>
    %c0_69 = arith.constant 0 : index
    %c0_70 = arith.constant 0 : index
    %148 = vector.load %arg20[%c0_69, %c0_70] : memref<1x96xf32, #tpu.memory_space<vmem>>, vector<1x96xf32>
    %149 = vector.broadcast %148 : vector<1x96xf32> to vector<16x96xf32>
    %150 = arith.addf %147, %149 : vector<16x96xf32>
    %151 = vector.extract_strided_slice %150 {offsets = [0, 0], sizes = [16, 32], strides = [1, 1]} : vector<16x96xf32> to vector<16x32xf32>
    %152 = vector.shape_cast %151 : vector<16x32xf32> to vector<2x8x32xf32>
    %153 = arith.truncf %152 : vector<2x8x32xf32> to vector<2x8x32xbf16>
    %154 = vector.extract_strided_slice %150 {offsets = [0, 32], sizes = [16, 32], strides = [1, 1]} : vector<16x96xf32> to vector<16x32xf32>
    %155 = arith.truncf %154 : vector<16x32xf32> to vector<16x32xbf16>
    %156 = vector.extract_strided_slice %150 {offsets = [0, 64], sizes = [16, 32], strides = [1, 1]} : vector<16x96xf32> to vector<16x32xf32>
    %157 = arith.truncf %156 : vector<16x32xf32> to vector<16x32xbf16>
    %cst_71 = arith.constant dense<0.000000e+00> : vector<64x32xf32>
    %158 = tpu.matmul %26, %155, %cst_71 {dimension_numbers = #tpu.dot_dimension_numbers<[1], [0], [0], [1], [0, 0, 1, 1], [], []>} : vector<64x16xbf16>, vector<16x32xbf16>, vector<64x32xf32> -> vector<64x32xf32>
    %159 = vector.shape_cast %158 : vector<64x32xf32> to vector<2x32x32xf32>
    %160 = vector.shape_cast %24 : vector<32x32xf32> to vector<1x32x32xf32>
    %161 = vector.broadcast %160 : vector<1x32x32xf32> to vector<2x32x32xf32>
    %162 = arith.mulf %159, %161 : vector<2x32x32xf32>
    %163 = arith.truncf %162 : vector<2x32x32xf32> to vector<2x32x32xbf16>
    %cst_72 = arith.constant dense<0.000000e+00> : vector<64x32xf32>
    %164 = tpu.matmul %26, %157, %cst_72 {dimension_numbers = #tpu.dot_dimension_numbers<[1], [0], [0], [1], [0, 0, 1, 1], [], []>} : vector<64x16xbf16>, vector<16x32xbf16>, vector<64x32xf32> -> vector<64x32xf32>
    %165 = vector.shape_cast %164 : vector<64x32xf32> to vector<2x32x32xf32>
    %166 = vector.shape_cast %24 : vector<32x32xf32> to vector<1x32x32xf32>
    %167 = vector.broadcast %166 : vector<1x32x32xf32> to vector<2x32x32xf32>
    %168 = arith.mulf %165, %167 : vector<2x32x32xf32>
    %169 = arith.truncf %168 : vector<2x32x32xf32> to vector<2x32x32xbf16>
    "tpu.trace_start"() <{level = 10 : i32, message = "bqc,bnc->bqn"}> : () -> ()
    %cst_73 = arith.constant dense<0.000000e+00> : vector<2x8x32xf32>
    %170 = tpu.matmul %153, %163, %cst_73 {dimension_numbers = #tpu.dot_dimension_numbers<[2], [2], [1], [1], [0, 0, 0, 1, 1, 1], [0], [0]>} : vector<2x8x32xbf16>, vector<2x32x32xbf16>, vector<2x8x32xf32> -> vector<2x8x32xf32>
    "tpu.trace_stop"() : () -> ()
    %171 = vector.broadcast %23 : vector<2x1x32xf32> to vector<2x8x32xf32>
    %172 = arith.addf %170, %171 : vector<2x8x32xf32>
    %cst_74 = arith.constant dense<0xFF800000> : vector<2x8xf32>
    %173 = vector.multi_reduction <maximumf>, %172, %cst_74 [2] : vector<2x8x32xf32> to vector<2x8xf32>
    %174 = vector.shape_cast %173 : vector<2x8xf32> to vector<2x8x1xf32>
    %175 = vector.broadcast %174 : vector<2x8x1xf32> to vector<2x8x32xf32>
    %176 = arith.subf %172, %175 : vector<2x8x32xf32>
    %177 = math.exp %176 : vector<2x8x32xf32>
    %178 = vector.shape_cast %177 : vector<2x8x32xf32> to vector<16x32xf32>
    %cst_75 = arith.constant dense<0.000000e+00> : vector<16x32xf32>
    %179 = tpu.matmul %178, %25, %cst_75 {dimension_numbers = #tpu.dot_dimension_numbers<[1], [0], [0], [1], [0, 0, 1, 1], [], []>} : vector<16x32xf32>, vector<32x32xf32>, vector<16x32xf32> -> vector<16x32xf32>
    %180 = tpu.reciprocal %179 {approx = true} : vector<16x32xf32> -> vector<16x32xf32>
    %181 = arith.mulf %178, %180 : vector<16x32xf32>
    %182 = vector.shape_cast %181 : vector<16x32xf32> to vector<2x8x32xf32>
    %183 = arith.truncf %182 : vector<2x8x32xf32> to vector<2x8x32xbf16>
    "tpu.trace_start"() <{level = 10 : i32, message = "bqn,bnc->bqc"}> : () -> ()
    %cst_76 = arith.constant dense<0.000000e+00> : vector<2x8x32xf32>
    %184 = tpu.matmul %183, %169, %cst_76 {dimension_numbers = #tpu.dot_dimension_numbers<[2], [1], [1], [2], [0, 0, 0, 1, 1, 2], [0], [0]>} : vector<2x8x32xbf16>, vector<2x32x32xbf16>, vector<2x8x32xf32> -> vector<2x8x32xf32>
    "tpu.trace_stop"() : () -> ()
    %185 = vector.shape_cast %184 : vector<2x8x32xf32> to vector<16x32xf32>
    %186 = arith.truncf %185 : vector<16x32xf32> to vector<16x32xbf16>
    %c0_77 = arith.constant 0 : index
    %c0_78 = arith.constant 0 : index
    %187 = vector.load %arg21[%c0_77, %c0_78] : memref<32x32xbf16, #tpu.memory_space<vmem>>, vector<32x32xbf16>
    %cst_79 = arith.constant dense<0.000000e+00> : vector<16x32xf32>
    %188 = tpu.matmul %186, %187, %cst_79 {dimension_numbers = #tpu.dot_dimension_numbers<[1], [0], [0], [1], [0, 0, 1, 1], [], []>} : vector<16x32xbf16>, vector<32x32xbf16>, vector<16x32xf32> -> vector<16x32xf32>
    %c0_80 = arith.constant 0 : index
    %c0_81 = arith.constant 0 : index
    %189 = vector.load %arg22[%c0_80, %c0_81] : memref<1x32xf32, #tpu.memory_space<vmem>>, vector<1x32xf32>
    %190 = vector.broadcast %189 : vector<1x32xf32> to vector<16x32xf32>
    %191 = arith.addf %188, %190 : vector<16x32xf32>
    %192 = arith.addf %191, %144 : vector<16x32xf32>
    %c0_82 = arith.constant 0 : index
    %c0_83 = arith.constant 0 : index
    %193 = vector.load %arg23[%c0_82, %c0_83] : memref<1x32xf32, #tpu.memory_space<vmem>>, vector<1x32xf32>
    %c0_84 = arith.constant 0 : index
    %c0_85 = arith.constant 0 : index
    %194 = vector.load %arg24[%c0_84, %c0_85] : memref<1x32xf32, #tpu.memory_space<vmem>>, vector<1x32xf32>
    %cst_86 = arith.constant dense<0.000000e+00> : vector<16xf32>
    %195 = vector.multi_reduction <add>, %192, %cst_86 [1] : vector<16x32xf32> to vector<16xf32>
    %196 = vector.shape_cast %195 : vector<16xf32> to vector<16x1xf32>
    %cst_87 = arith.constant 3.200000e+01 : f32
    %197 = vector.broadcast %cst_87 : f32 to vector<16x1xf32>
    %198 = arith.divf %196, %197 : vector<16x1xf32>
    %199 = vector.broadcast %198 : vector<16x1xf32> to vector<16x32xf32>
    %200 = arith.subf %192, %199 : vector<16x32xf32>
    %201 = arith.mulf %200, %200 : vector<16x32xf32>
    %cst_88 = arith.constant dense<0.000000e+00> : vector<16xf32>
    %202 = vector.multi_reduction <add>, %201, %cst_88 [1] : vector<16x32xf32> to vector<16xf32>
    %203 = vector.shape_cast %202 : vector<16xf32> to vector<16x1xf32>
    %cst_89 = arith.constant 3.200000e+01 : f32
    %204 = vector.broadcast %cst_89 : f32 to vector<16x1xf32>
    %205 = arith.divf %203, %204 : vector<16x1xf32>
    %cst_90 = arith.constant 9.99999996E-13 : f32
    %206 = vector.broadcast %cst_90 : f32 to vector<16x1xf32>
    %207 = arith.addf %205, %206 : vector<16x1xf32>
    %208 = math.rsqrt %207 : vector<16x1xf32>
    %209 = vector.broadcast %208 : vector<16x1xf32> to vector<16x32xf32>
    %210 = arith.mulf %200, %209 : vector<16x32xf32>
    %211 = vector.broadcast %193 : vector<1x32xf32> to vector<16x32xf32>
    %212 = arith.mulf %210, %211 : vector<16x32xf32>
    %213 = vector.broadcast %194 : vector<1x32xf32> to vector<16x32xf32>
    %214 = arith.addf %212, %213 : vector<16x32xf32>
    %215 = arith.truncf %214 : vector<16x32xf32> to vector<16x32xbf16>
    %c0_91 = arith.constant 0 : index
    %c0_92 = arith.constant 0 : index
    %216 = vector.load %arg25[%c0_91, %c0_92] : memref<32x64xbf16, #tpu.memory_space<vmem>>, vector<32x64xbf16>
    %cst_93 = arith.constant dense<0.000000e+00> : vector<16x64xf32>
    %217 = tpu.matmul %215, %216, %cst_93 {dimension_numbers = #tpu.dot_dimension_numbers<[1], [0], [0], [1], [0, 0, 1, 1], [], []>} : vector<16x32xbf16>, vector<32x64xbf16>, vector<16x64xf32> -> vector<16x64xf32>
    %c0_94 = arith.constant 0 : index
    %c0_95 = arith.constant 0 : index
    %218 = vector.load %arg26[%c0_94, %c0_95] : memref<1x64xf32, #tpu.memory_space<vmem>>, vector<1x64xf32>
    %219 = vector.broadcast %218 : vector<1x64xf32> to vector<16x64xf32>
    %220 = arith.addf %217, %219 : vector<16x64xf32>
    %cst_96 = arith.constant 5.000000e-01 : f32
    %221 = vector.broadcast %cst_96 : f32 to vector<16x64xf32>
    %222 = arith.mulf %221, %220 : vector<16x64xf32>
    %cst_97 = arith.constant 4.471500e-02 : f32
    %223 = vector.broadcast %cst_97 : f32 to vector<16x64xf32>
    %224 = arith.mulf %223, %220 : vector<16x64xf32>
    %225 = arith.mulf %224, %220 : vector<16x64xf32>
    %226 = arith.mulf %225, %220 : vector<16x64xf32>
    %227 = arith.addf %220, %226 : vector<16x64xf32>
    %cst_98 = arith.constant 0.797884583 : f32
    %228 = vector.broadcast %cst_98 : f32 to vector<16x64xf32>
    %229 = arith.mulf %228, %227 : vector<16x64xf32>
    %230 = math.tanh %229 : vector<16x64xf32>
    %cst_99 = arith.constant 1.000000e+00 : f32
    %231 = vector.broadcast %cst_99 : f32 to vector<16x64xf32>
    %232 = arith.addf %231, %230 : vector<16x64xf32>
    %233 = arith.mulf %222, %232 : vector<16x64xf32>
    %234 = arith.truncf %233 : vector<16x64xf32> to vector<16x64xbf16>
    %c0_100 = arith.constant 0 : index
    %c0_101 = arith.constant 0 : index
    %235 = vector.load %arg27[%c0_100, %c0_101] : memref<64x32xbf16, #tpu.memory_space<vmem>>, vector<64x32xbf16>
    %cst_102 = arith.constant dense<0.000000e+00> : vector<16x32xf32>
    %236 = tpu.matmul %234, %235, %cst_102 {dimension_numbers = #tpu.dot_dimension_numbers<[1], [0], [0], [1], [0, 0, 1, 1], [], []>} : vector<16x64xbf16>, vector<64x32xbf16>, vector<16x32xf32> -> vector<16x32xf32>
    %c0_103 = arith.constant 0 : index
    %c0_104 = arith.constant 0 : index
    %237 = vector.load %arg28[%c0_103, %c0_104] : memref<1x32xf32, #tpu.memory_space<vmem>>, vector<1x32xf32>
    %238 = vector.broadcast %237 : vector<1x32xf32> to vector<16x32xf32>
    %239 = arith.addf %236, %238 : vector<16x32xf32>
    %240 = arith.addf %239, %214 : vector<16x32xf32>
    %c0_105 = arith.constant 0 : index
    %c0_106 = arith.constant 0 : index
    %241 = vector.load %arg29[%c0_105, %c0_106] : memref<1x32xf32, #tpu.memory_space<vmem>>, vector<1x32xf32>
    %c0_107 = arith.constant 0 : index
    %c0_108 = arith.constant 0 : index
    %242 = vector.load %arg30[%c0_107, %c0_108] : memref<1x32xf32, #tpu.memory_space<vmem>>, vector<1x32xf32>
    %cst_109 = arith.constant dense<0.000000e+00> : vector<16xf32>
    %243 = vector.multi_reduction <add>, %240, %cst_109 [1] : vector<16x32xf32> to vector<16xf32>
    %244 = vector.shape_cast %243 : vector<16xf32> to vector<16x1xf32>
    %cst_110 = arith.constant 3.200000e+01 : f32
    %245 = vector.broadcast %cst_110 : f32 to vector<16x1xf32>
    %246 = arith.divf %244, %245 : vector<16x1xf32>
    %247 = vector.broadcast %246 : vector<16x1xf32> to vector<16x32xf32>
    %248 = arith.subf %240, %247 : vector<16x32xf32>
    %249 = arith.mulf %248, %248 : vector<16x32xf32>
    %cst_111 = arith.constant dense<0.000000e+00> : vector<16xf32>
    %250 = vector.multi_reduction <add>, %249, %cst_111 [1] : vector<16x32xf32> to vector<16xf32>
    %251 = vector.shape_cast %250 : vector<16xf32> to vector<16x1xf32>
    %cst_112 = arith.constant 3.200000e+01 : f32
    %252 = vector.broadcast %cst_112 : f32 to vector<16x1xf32>
    %253 = arith.divf %251, %252 : vector<16x1xf32>
    %cst_113 = arith.constant 9.99999996E-13 : f32
    %254 = vector.broadcast %cst_113 : f32 to vector<16x1xf32>
    %255 = arith.addf %253, %254 : vector<16x1xf32>
    %256 = math.rsqrt %255 : vector<16x1xf32>
    %257 = vector.broadcast %256 : vector<16x1xf32> to vector<16x32xf32>
    %258 = arith.mulf %248, %257 : vector<16x32xf32>
    %259 = vector.broadcast %241 : vector<1x32xf32> to vector<16x32xf32>
    %260 = arith.mulf %258, %259 : vector<16x32xf32>
    %261 = vector.broadcast %242 : vector<1x32xf32> to vector<16x32xf32>
    %262 = arith.addf %260, %261 : vector<16x32xf32>
    %263 = arith.truncf %262 : vector<16x32xf32> to vector<16x32xbf16>
    %c0_114 = arith.constant 0 : index
    %c0_115 = arith.constant 0 : index
    %264 = vector.load %arg31[%c0_114, %c0_115] : memref<32x32xbf16, #tpu.memory_space<vmem>>, vector<32x32xbf16>
    %cst_116 = arith.constant dense<0.000000e+00> : vector<16x32xf32>
    %265 = tpu.matmul %263, %264, %cst_116 {dimension_numbers = #tpu.dot_dimension_numbers<[1], [0], [0], [1], [0, 0, 1, 1], [], []>} : vector<16x32xbf16>, vector<32x32xbf16>, vector<16x32xf32> -> vector<16x32xf32>
    %c0_117 = arith.constant 0 : index
    %c0_118 = arith.constant 0 : index
    %266 = vector.load %arg32[%c0_117, %c0_118] : memref<1x32xf32, #tpu.memory_space<vmem>>, vector<1x32xf32>
    %267 = vector.broadcast %266 : vector<1x32xf32> to vector<16x32xf32>
    %268 = arith.addf %265, %267 : vector<16x32xf32>
    %269 = math.tanh %268 : vector<16x32xf32>
    %270 = arith.truncf %269 : vector<16x32xf32> to vector<16x32xbf16>
    %c0_119 = arith.constant 0 : index
    %c0_120 = arith.constant 0 : index
    %271 = vector.load %arg33[%c0_119, %c0_120] : memref<32x2xbf16, #tpu.memory_space<vmem>>, vector<32x2xbf16>
    %cst_121 = arith.constant dense<0.000000e+00> : vector<16x2xf32>
    %272 = tpu.matmul %270, %271, %cst_121 {dimension_numbers = #tpu.dot_dimension_numbers<[1], [0], [0], [1], [0, 0, 1, 1], [], []>} : vector<16x32xbf16>, vector<32x2xbf16>, vector<16x2xf32> -> vector<16x2xf32>
    %c0_122 = arith.constant 0 : index
    %c0_123 = arith.constant 0 : index
    %273 = vector.load %arg34[%c0_122, %c0_123] : memref<1x2xf32, #tpu.memory_space<vmem>>, vector<1x2xf32>
    %274 = vector.broadcast %273 : vector<1x2xf32> to vector<16x2xf32>
    %275 = arith.addf %272, %274 : vector<16x2xf32>
    %c0_124 = arith.constant 0 : index
    %c0_125 = arith.constant 0 : index
    %276 = vector.load %arg35[%c0_124, %c0_125] : memref<16x2xf32, #tpu.memory_space<vmem>>, vector<16x2xf32>
    tpu.vector_store %arg35[%c0_124, %c0_125], %275 {strides = array<i32>} : memref<16x2xf32, #tpu.memory_space<vmem>>, vector<16x2xf32>,
    return
  }
}

</mosaic_0001>

<bundles_post_ra>
// kernel: bert_forward.1
= control target key start
LH: loop header
LB: loop body
LE: loop exit
PB: predicated region body
PF: predicated region fallthrough
CT: control target
= control target key end

     0   :  { %vm151_vm0 = vcmask 261120   ;;  %s2652_s6 = smov 7   ;;  %v2653_v15 = vmov 0.0   ;;  %vm2654_vm1 = vmmov 0   ;;  %s2655_s10 = smov 5   ;;  %vm308_vm2 = vcmask 130048   ;;  %s3098_s0 = inlined_call_operand.smem [shape: u32[36], index: -1, kind: input, shape index: {}] }
   0x1   :  { %s1_s5 = sld [smem:[%s3098_s0]]   ;;  %2307 = vmatprep.subr.bf16.mxu0 %v2653_v15  ;;  %2311 = vmatprep.mubr.msk.bf16.mxu0 %vm2654_vm1, %v2653_v15  ;;  %s2656_s14 = smov 6   ;;  %vm1013_vm3 = vcmask 523264   ;;  %vm2087_vm4 = vcmask 15360  }
   0x2   :  { %s2100_s9 = sld [smem:[%s3098_s0 + %s2652_s6]]   ;;  %s2657_s18 = smov 4  }
   0x3   :  { %s2098_s13 = sld [smem:[%s3098_s0 + %s2655_s10]]   ;;  %s2658_s22 = smov 8  }
   0x4   :  { %s2099_s17 = sld [smem:[%s3098_s0 + %s2656_s14]]   ;;  %s2659_s26 = smov 64  }
   0x5   :  { %s2726_s21 = sld [smem:[%s3098_s0 + %s2657_s18]]   ;;  %s2660_s27 = smov 96  }
   0x6   :  { %s2101_s25 = sld [smem:[%s3098_s0 + %s2658_s22]]   ;;  %s2661_s28 = smov 2  }
   0x7   :  { %v147_v0 = vld [vmem:[%s1_s5] sm:$0xff]  ;;  %v148_v1 = vld [vmem:[%s1_s5 + $0x8] sm:$0xff]  ;;  %s2095_s1 = sld [smem:[%s3098_s0 + %s2661_s28]]   ;;  %s2662_s2 = smov 1  }
   0x8   :  { %v152_v2 = vsel %vm151_vm0, %v147_v0, 0.0  ;;  %v155_v3 = vsel %vm151_vm0, %v148_v1, 0.0  ;;  %v2576_v14 = vld [vmem:[%s2100_s9] sm:$0xff]   ;;  %v2577_v16 = vld [vmem:[%s2100_s9 + $0x8] sm:$0xff]   ;;  %s2094_s5 = sld [smem:[%s3098_s0 + %s2662_s2]]   ;;  %s2663_s6 = smov 3  }
   0x9   :  { %153 = vadd.xlane.f32.xlu0 %v152_v2  ;;  %2308 = vmatpush3.bf16.msra.mxu0 %v2576_v14  ;;  %v2129_v25 = vld [vmem:[%s2098_s13] ss:$0 sm:$0xff]  ;;  %s2096_s9 = sld [smem:[%s3098_s0 + %s2663_s6]]   ;;  %s2664_s10 = smov 9  }
   0xa   :  { %2309 = vmatprep.subr.bf16.mxu0 %v2653_v15  ;;  %v2130_v29 = vld [vmem:[%s2099_s17] ss:$0 sm:$0xff]  ;;  %s2102_s13 = sld [smem:[%s3098_s0 + %s2664_s10]]   ;;  %s2665_s14 = smov 10  }
   0xb   :  { %v2732_v34 = vld [vmem:[%s2726_s21] sm:$0xff]   ;;  %v2747_v45 = vld [vmem:[%s2726_s21 + $0x8] sm:$0xff]   ;;  %v2750_v46 = vld [vmem:[%s2726_s21 + $0x10] sm:$0xff]   ;;  %s2103_s17 = sld [smem:[%s3098_s0 + %s2665_s14]]   ;;  %s2666_s18 = smov 13  }
   0xc   :  { %2317 = vmatprep.mubr.msk.bf16.mxu1 %vm308_vm2, %v2732_v34  ;;  %v2131_v35 = vld [vmem:[%s2101_s25] ss:$0 sm:$0xff]  ;;  %v2763_v47 = vld [vmem:[%s2726_s21 + $0x18] sm:$0xff]   ;;  %s2106_s21 = sld [smem:[%s3098_s0 + %s2666_s18]]   ;;  %s2667_s22 = smov 11  }
   0xd   :  { %156 = vadd.xlane.f32.xlu0 %v155_v3  ;;  %2310 = vmatpush3.bf16.msra.mxu0 %v2577_v16  ;;  %v2776_v48 = vld [vmem:[%s2095_s1 + $0x10] sm:$0xff]  ;;  %v2778_v50 = vld [vmem:[%s2095_s1 + $0x18] sm:$0xff]  ;;  %v2780_v52 = vld [vmem:[%s2095_s1] sm:$0xff]  ;;  %s2104_s25 = sld [smem:[%s3098_s0 + %s2667_s22]]   ;;  %s2668_s28 = smov 12  }
   0xe   :  { %v2782_v54 = vld [vmem:[%s2095_s1 + $0x8] sm:$0xff]  ;;  %s2105_s1 = sld [smem:[%s3098_s0 + %s2668_s28]]   ;;  %s2669_s2 = smov 15  }
   0xf   :  { %s2670_s6 = smov 14   ;;  %s2671_s10 = smov 16  }
  0x10   :  { %s2672_s14 = smov 19   ;;  %s2673_s18 = smov 17  }
  0x11   :  { %s2674_s22 = smov 18   ;;  %s2675_s28 = smov 20  }
  0x12   :  { %s2677_s4 = smov 22   ;;  %s2678_s8 = smov 25  }
  0x13   :  { %s2115_s7 = sld [smem:[%s3098_s0 + %s2677_s4]]   ;;  %s2679_s12 = smov 23  }
  0x14   :  { %s2118_s11 = sld [smem:[%s3098_s0 + %s2678_s8]]   ;;  %s2680_s16 = smov 24  }
  0x15   :  { %s2116_s15 = sld [smem:[%s3098_s0 + %s2679_s12]]   ;;  %s2681_s20 = smov 27  }
  0x16   :  { %s2117_s19 = sld [smem:[%s3098_s0 + %s2680_s16]]   ;;  %s2682_s24 = smov 26  }
  0x17   :  { %s2120_s23 = sld [smem:[%s3098_s0 + %s2681_s20]]   ;;  %s2683_s30 = smov 28  }
  0x18   :  { %s2119_s29 = sld [smem:[%s3098_s0 + %s2682_s24]]  }
  0x96   :  { %v154_v4 = vpop.xlane.xlu0 %153 }
  0x97   :  { %v159_v5 = vmul.f32 0.03125, %v154_v4 }
  0x99   :  { %v161_v6 = vsub.f32 %v147_v0, %v159_v5 }
  0x9a   :  { %v157_v7 = vpop.xlane.xlu0 %156 }
  0x9b   :  { %v160_v8 = vmul.f32 0.03125, %v157_v7  ;;  %v163_v9 = vmul.f32 %v161_v6, %v161_v6 }
  0x9d   :  { %v162_v10 = vsub.f32 %v148_v1, %v160_v8  ;;  %v165_v11 = vsel %vm151_vm0, %v163_v9, 0.0 }
  0x9e   :  { %166 = vadd.xlane.f32.xlu1 %v165_v11 }
  0x9f   :  { %v164_v12 = vmul.f32 %v162_v10, %v162_v10 }
  0xa1   :  { %v168_v13 = vsel %vm151_vm0, %v164_v12, 0.0 }
  0xa2   :  { %169 = vadd.xlane.f32.xlu1 %v168_v13 }
 0x12b   :  { %v167_v17 = vpop.xlane.xlu1 %166 }
 0x12c   :  { %v171_v18 = vmul.f32 0.03125, %v167_v17 }
 0x12e   :  { %v173_v19 = vadd.f32 1e-12, %v171_v18 }
 0x12f   :  { %v170_v20 = vpop.xlane.xlu1 %169 }
 0x130   :  { %2604 = vrsqrt.f32 %v173_v19  ;;  %v172_v21 = vmul.f32 0.03125, %v170_v20 }
 0x132   :  { %v174_v22 = vadd.f32 1e-12, %v172_v21 }
 0x134   :  { %2606 = vrsqrt.f32 %v174_v22 }
 0x13a   :  { %v2605_v23 = vpop.eup %2604 }
 0x13b   :  { %v177_v24 = vmul.f32 %v2605_v23, %v161_v6 }
 0x13d   :  { %v185_v28 = vmul.f32 %v2129_v25, %v177_v24 }
 0x13e   :  { %v2607_v26 = vpop.eup %2606 }
 0x13f   :  { %v178_v27 = vmul.f32 %v2607_v26, %v162_v10  ;;  %v2716_v31 = vadd.f32 %v2130_v29, %v185_v28 }
 0x141   :  { %v186_v30 = vmul.f32 %v2129_v25, %v178_v27 }
 0x143   :  { %v2718_v32 = vadd.f32 %v2130_v29, %v186_v30 }
 0x145   :  { %v213_v33 = vpack.c.bf16 %v2718_v32, %v2716_v31 }
 0x147   :  { %2312 = vmatmul.mubr.msk.bf16.vlgmr.msra.gmra.mrb[0].mxu0 %vm151_vm0, %v213_v33 }
 0x148   :  { %2327 = vmatprep.mubr.msk.bf16.mxu0 %vm308_vm2, %v2732_v34 }
 0x21a   :  { %v274_v36 = vpop.f32.mrb[0].mxu0 }
 0x21b   :  { %v2313_v37 = vpop.f32.mrb[1].mxu0  ;;  %v2738_v39 = vadd.f32 %v2131_v35, %v274_v36 }
 0x21c   :  { %v277_v38 = vpop.f32.mrb[2].mxu0 }
 0x21d   :  { %v2740_v40 = vadd.f32 %v2131_v35, %v277_v38  ;;  %v2314_v41 = vpop.f32.mrb[3].mxu0  ;;  %v281_v35 = vpack.c.bf16 %v2738_v39, %v2738_v39  ;;  %v2832_v38 = vld [vmem:[%s2094_s5] ss:$0 sm:$0xff] }
 0x21f   :  { %v283_v42 = vpack.c.bf16 %v2740_v40, %v2738_v39  ;;  %v282_v37 = vpack.c.bf16 %v2740_v40, %v2740_v40 }
 0x221   :  { %398 = vrot.lane.b32.xlu1 %v283_v42, %s2659_s26  ;;  %305 = vrot.lane.b32.xlu0 %v283_v42, %s2660_s27 }
 0x293   :  { %v399_v43 = vpop.permute.xlu1 %398  ;;  %v306_v44 = vpop.permute.xlu0 %305 }
 0x294   :  { %2315 = vmatprep.subr.bf16.mxu1 %v306_v44  ;;  %2325 = vmatprep.subr.bf16.mxu0 %v399_v43 }
 0x295   :  { %2316 = vmatpush3.bf16.msra.mxu1 %v306_v44  ;;  %2326 = vmatpush3.bf16.msra.mxu0 %v399_v43 }
 0x296   :  { %2335 = vmatprep.subr.bf16.mxu1 %v2653_v15  ;;  %2343 = vmatprep.subr.bf16.mxu0 %v2653_v15 }
 0x298   :  { %2318 = vmatmul.mubr.msk.bf16.vlgmr.msra.gmra.mrb[0].mxu1 %vm308_vm2, %v2747_v45  ;;  %2328 = vmatmul.mubr.msk.bf16.vlgmr.msra.gmra.mrb[4].mxu0 %vm308_vm2, %v2747_v45 }
 0x299   :  { %2321 = vmatprep.mubr.msk.bf16.mxu1 %vm308_vm2, %v2750_v46  ;;  %2331 = vmatprep.mubr.msk.bf16.mxu0 %vm308_vm2, %v2750_v46 }
 0x2a0   :  { %2322 = vmatmul.mubr.msk.bf16.gmra.mrb[4].mxu1 %vm308_vm2, %v2763_v47  ;;  %2332 = vmatmul.mubr.msk.bf16.gmra.mrb[8].mxu0 %vm308_vm2, %v2763_v47 }
 0x2a1   :  { %2339 = vmatprep.mubr.msk.bf16.mxu1 %vm2654_vm1, %v2653_v15  ;;  %2347 = vmatprep.mubr.msk.bf16.mxu0 %vm2654_vm1, %v2653_v15 }
 0x36b   :  { %v2319_v49 = vpop.f32.mrb[0].mxu1  ;;  %v2329_v51 = vpop.f32.mrb[4].mxu0 }
 0x36c   :  { %v355_v53 = vpop.f32.mrb[1].mxu1  ;;  %v2785_v55 = vmul.f32 %v2329_v51, %v2776_v48  ;;  %v435_v56 = vpop.f32.mrb[5].mxu0  ;;  %v388_v60 = vmul.f32 %v2319_v49, %v2776_v48  ;;  %v2836_v49 = vld [vmem:[%s2094_s5 + $0x1] ss:$0 sm:$0xff]  ;;  %s2108_s5 = sld [smem:[%s3098_s0 + %s2669_s2]]   ;;  %s2684_s2 = smov 31  }
 0x36d   :  { %v2320_v57 = vpop.f32.mrb[2].mxu1  ;;  %v2788_v58 = vmul.f32 %v435_v56, %v2780_v52  ;;  %v2330_v59 = vpop.f32.mrb[6].mxu0  ;;  %v386_v1 = vmul.f32 %v355_v53, %v2780_v52 }
 0x36e   :  { %v389_v61 = vmul.f32 %v2320_v57, %v2778_v50  ;;  %v358_v62 = vpop.f32.mrb[3].mxu1  ;;  %v2793_v63 = vmul.f32 %v2330_v59, %v2778_v50  ;;  %v438_v0 = vpop.f32.mrb[7].mxu0 }
 0x36f   :  { %v387_v2 = vmul.f32 %v358_v62, %v2782_v54  ;;  %v2798_v3 = vmul.f32 %v438_v0, %v2782_v54  ;;  %v202_v62 = vld [vmem:[%s2096_s9 + $0x8] sm:$0xff] }
 0x370   :  { %v395_v4 = vpack.c.bf16 %v389_v61, %v388_v60  ;;  %v475_v5 = vpack.c.bf16 %v2793_v63, %v2785_v55  ;;  %v201_v61 = vld [vmem:[%s2096_s9] sm:$0xff]  ;;  %v2583_v55 = vld [vmem:[%s2102_s13 + $0x8] sm:$0xff]  }
 0x371   :  { %v394_v6 = vpack.c.bf16 %v387_v2, %v386_v1  ;;  %v474_v7 = vpack.c.bf16 %v2798_v3, %v2788_v58  ;;  %v2843_v0 = vpack.c.bf16 %v202_v62, %v201_v61  ;;  %v203_v1 = vld [vmem:[%s2096_s9 + $0x10] sm:$0xff]  ;;  %v204_v2 = vld [vmem:[%s2096_s9 + $0x18] sm:$0xff]  ;;  %s2107_s9 = sld [smem:[%s3098_s0 + %s2670_s6]]   ;;  %s2685_s6 = smov 29  }
 0x372   :  { %v497_v30 = vsel %vm151_vm0, %v395_v4, 0  ;;  %v2847_v4 = vpack.c.bf16 %v204_v2, %v203_v1  ;;  %v2585_v1 = vld [vmem:[%s2106_s21 + $0x8] sm:$0xff]  }
 0x373   :  { %v2323_v8 = vpop.f32.mrb[4].mxu1  ;;  %v494_v9 = vsel %vm151_vm0, %v394_v6, 0  ;;  %v2333_v10 = vpop.f32.mrb[8].mxu0 }
 0x374   :  { %v371_v11 = vpop.f32.mrb[5].mxu1  ;;  %2336 = vmatpush3.bf16.xpose.msra.mxu1 %v494_v9  ;;  %v472_v12 = vmul.f32 %v2333_v10, %v2776_v48  ;;  %v451_v13 = vpop.f32.mrb[9].mxu0  ;;  %v392_v18 = vmul.f32 %v2323_v8, %v2776_v48 }
 0x375   :  { %v2324_v14 = vpop.f32.mrb[6].mxu1  ;;  %2337 = vmatprep.subr.bf16.mxu1 %v2653_v15  ;;  %v470_v16 = vmul.f32 %v451_v13, %v2780_v52  ;;  %v2334_v17 = vpop.f32.mrb[10].mxu0  ;;  %v390_v23 = vmul.f32 %v371_v11, %v2780_v52 }
 0x376   :  { %v393_v19 = vmul.f32 %v2324_v14, %v2778_v50  ;;  %v374_v20 = vpop.f32.mrb[7].mxu1  ;;  %v473_v21 = vmul.f32 %v2334_v17, %v2778_v50  ;;  %v454_v22 = vpop.f32.mrb[11].mxu0 }
 0x377   :  { %v391_v24 = vmul.f32 %v374_v20, %v2782_v54  ;;  %v471_v25 = vmul.f32 %v454_v22, %v2782_v54  ;;  %v2582_v20 = vld [vmem:[%s2102_s13] sm:$0xff]   ;;  %s2109_s13 = sld [smem:[%s3098_s0 + %s2671_s10]]   ;;  %s2686_s10 = smov 30  }
 0x378   :  { %v397_v26 = vpack.c.bf16 %v393_v19, %v392_v18  ;;  %v477_v27 = vpack.c.bf16 %v473_v21, %v472_v12 }
 0x379   :  { %v396_v28 = vpack.c.bf16 %v391_v24, %v390_v23  ;;  %v476_v29 = vpack.c.bf16 %v471_v25, %v470_v16 }
 0x37a   :  { %v546_v36 = vsel %vm151_vm0, %v397_v26, 0 }
 0x37b   :  { %v543_v33 = vsel %vm151_vm0, %v396_v28, 0 }
 0x37c   :  { %2338 = vmatpush3.bf16.xpose.msra.mxu1 %v497_v30  ;;  %2344 = vmatpush3.bf16.xpose.msra.mxu0 %v543_v33 }
 0x37d   :  { %2345 = vmatprep.subr.bf16.mxu0 %v2653_v15  ;;  %2522 = vmatprep.subr.bf16.mxu1 %v2843_v0 }
 0x383   :  { %2340 = vmatmul.mubr.msk.bf16.vlgmr.msra.gmra.mrb[8].mxu1 %vm151_vm0, %v281_v35 }
 0x384   :  { %2346 = vmatpush3.bf16.xpose.msra.mxu0 %v546_v36  ;;  %2524 = vmatpush3.bf16.msra.mxu1 %v2843_v0 }
 0x385   :  { %2370 = vmatprep.subr.bf16.mxu0 %v2653_v15  ;;  %2526 = vmatprep.subr.bf16.mxu1 %v2847_v4 }
 0x388   :  { %2528 = vmatpush3.bf16.msra.mxu1 %v2847_v4 }
 0x389   :  { %2362 = vmatprep.subr.bf16.mxu1 %v2653_v15 }
 0x38b   :  { %2348 = vmatmul.mubr.msk.bf16.vlgmr.msra.gmra.mrb[12].mxu0 %vm151_vm0, %v282_v37 }
 0x38c   :  { %2371 = vmatpush3.bf16.msra.mxu0 %v476_v29  ;;  %2374 = vmatprep.mubr.msk.bf16.mxu0 %vm2654_vm1, %v2653_v15  ;;  %v2155_v29 = vld [vmem:[%s2103_s17] ss:$0 sm:$0xff]  ;;  %s2112_s17 = sld [smem:[%s3098_s0 + %s2672_s14]]   ;;  %s2687_s14 = smov 33  }
 0x38d   :  { %2372 = vmatprep.subr.bf16.mxu0 %v2653_v15 }
 0x390   :  { %2373 = vmatpush3.bf16.msra.mxu0 %v477_v27 }
 0x391   :  { %2386 = vmatprep.subr.bf16.mxu0 %v2653_v15 }
 0x456   :  { %v533_v39 = vpop.f32.mrb[8].mxu1 }
 0x457   :  { %v534_v40 = vadd.f32 %v2832_v38, %v533_v39  ;;  %v2341_v41 = vpop.f32.mrb[9].mxu1 }
 0x458   :  { %v536_v42 = vpop.f32.mrb[10].mxu1 }
 0x459   :  { %v2342_v43 = vpop.f32.mrb[11].mxu1  ;;  %v588_v44 = vsel %vm151_vm0, %v534_v40, -inf }
 0x45a   :  { %589 = vmax.xlane.f32.xlu1 %v588_v44 }
 0x45e   :  { %v582_v51 = vpop.f32.mrb[12].mxu0 }
 0x45f   :  { %v583_v53 = vadd.f32 %v2836_v49, %v582_v51  ;;  %v2349_v56 = vpop.f32.mrb[13].mxu0 }
 0x460   :  { %v585_v57 = vpop.f32.mrb[14].mxu0 }
 0x461   :  { %v2350_v59 = vpop.f32.mrb[15].mxu0  ;;  %v591_v60 = vsel %vm151_vm0, %v583_v53, -inf }
 0x462   :  { %592 = vmax.xlane.f32.xlu0 %v591_v60 }
 0x4e7   :  { %v590_v6 = vpop.xlane.xlu1 %589 }
 0x4e8   :  { %v594_v8 = vsub.f32 %v534_v40, %v590_v6 }
 0x4ea   :  { %v596_v9 = vmul.f32 1.442695, %v594_v8 }
 0x4ec   :  { %2608 = vpow2.f32 %v596_v9 }
 0x4ef   :  { %v593_v10 = vpop.xlane.xlu0 %592 }
 0x4f0   :  { %v595_v11 = vsub.f32 %v583_v53, %v593_v10 }
 0x4f2   :  { %v598_v12 = vmul.f32 1.442695, %v595_v11 }
 0x4f4   :  { %2610 = vpow2.f32 %v598_v12 }
 0x4f6   :  { %v2609_v13 = vpop.eup %2608 }
 0x4f7   :  { %2359 = vmatprep.mubr.msk.f32.mxu1 %vm151_vm0, %v2609_v13 }
 0x4fe   :  { %v2611_v14 = vpop.eup %2610 }
 0x4ff   :  { %2360 = vmatmul.mubr.msk.f32.vlgmr.msra.gmra.mrb[12].mxu1 %vm151_vm0, %v2611_v14 }
 0x500   :  { %2363 = vmatpush3.bf16.msra.mxu1 %v474_v7  ;;  %2366 = vmatprep.mubr.msk.bf16.mxu1 %vm2654_vm1, %v2653_v15 }
 0x501   :  { %2364 = vmatprep.subr.bf16.mxu1 %v2653_v15 }
 0x504   :  { %2365 = vmatpush3.bf16.msra.mxu1 %v475_v5 }
 0x505   :  { %2378 = vmatprep.subr.bf16.mxu1 %v2653_v15 }
 0x5d2   :  { %v2361_v16 = vpop.f32.mrb[12].mxu1 }
 0x5d3   :  { %2612 = vrcp.f32 %v2361_v16  ;;  %v672_v58 = vpop.f32.mrb[13].mxu1 }
 0x5d4   :  { %2614 = vrcp.f32 %v672_v58 }
 0x5dd   :  { %v2613_v3 = vpop.eup %2612 }
 0x5de   :  { %v2615_v7 = vpop.eup %2614  ;;  %v684_v17 = vmul.f32 %v2613_v3, %v2611_v14 }
 0x5df   :  { %v683_v18 = vmul.f32 %v2615_v7, %v2609_v13  ;;  %v2159_v13 = vld [vmem:[%s2104_s25] ss:$0 sm:$0xff]  ;;  %s2111_s25 = sld [smem:[%s3098_s0 + %s2674_s22]]   ;;  %s2689_s22 = smov 34  }
 0x5e0   :  { %v686_v19 = vpack.c.bf16 %v684_v17, %v684_v17  ;;  %v2160_v7 = vld [vmem:[%s2105_s1] ss:$0 sm:$0xff]  ;;  %s2113_s1 = sld [smem:[%s3098_s0 + %s2675_s28]]   ;;  %s2690_s28 = smov 35  }
 0x5e1   :  { %v685_v21 = vpack.c.bf16 %v683_v18, %v683_v18 }
 0x5e2   :  { %2375 = vmatmul.mubr.msk.bf16.vlgmr.msra.gmra.mrb[16].mxu0 %vm151_vm0, %v686_v19 }
 0x5e3   :  { %2367 = vmatmul.mubr.msk.bf16.vlgmr.msra.gmra.mrb[16].mxu1 %vm151_vm0, %v685_v21  ;;  %2390 = vmatprep.mubr.msk.bf16.mxu0 %vm2654_vm1, %v2653_v15  ;;  %v2586_v21 = vld [vmem:[%s2108_s5] sm:$0xff]  }
 0x5e4   :  { %2379 = vmatpush3.bf16.msra.mxu1 %v2582_v20  ;;  %2382 = vmatprep.mubr.msk.bf16.mxu1 %vm2654_vm1, %v2653_v15 }
 0x5e5   :  { %2380 = vmatprep.subr.bf16.mxu1 %v2653_v15 }
 0x5e8   :  { %2381 = vmatpush3.bf16.msra.mxu1 %v2583_v55  ;;  %v2587_v55 = vld [vmem:[%s2108_s5 + $0x8] sm:$0xff]  }
 0x5e9   :  { %2394 = vmatprep.subr.bf16.mxu1 %v2653_v15 }
 0x6b5   :  { %v767_v63 = vpop.f32.mrb[16].mxu0 }
 0x6b6   :  { %v724_v5 = vpop.f32.mrb[16].mxu1  ;;  %v2376_v22 = vpop.f32.mrb[17].mxu0 }
 0x6b7   :  { %v773_v23 = vpack.c.bf16 %v767_v63, %v724_v5  ;;  %v2368_v24 = vpop.f32.mrb[17].mxu1  ;;  %v770_v25 = vpop.f32.mrb[18].mxu0  ;;  %v2588_v63 = vld [vmem:[%s2108_s5 + $0x10] sm:$0xff]   ;;  %v2589_v5 = vld [vmem:[%s2108_s5 + $0x18] sm:$0xff]   ;;  %v2161_v22 = vld [vmem:[%s2107_s9] ss:$0 sm:$0xff]  ;;  %s2124_s5 = sld [smem:[%s3098_s0 + %s2684_s2]]  }
 0x6b8   :  { %v727_v26 = vpop.f32.mrb[18].mxu1  ;;  %v2377_v27 = vpop.f32.mrb[19].mxu0  ;;  %s2122_s9 = sld [smem:[%s3098_s0 + %s2685_s6]]  }
 0x6b9   :  { %v2369_v28 = vpop.f32.mrb[19].mxu1  ;;  %2383 = vmatmul.mubr.msk.bf16.vlgmr.msra.gmra.mrb[20].mxu1 %vm151_vm0, %v773_v23 }
 0x6ba   :  { %2402 = vmatprep.mubr.msk.bf16.mxu1 %vm2654_vm1, %v2653_v15  ;;  %2395 = vmatpush3.bf16.msra.mxu1 %v2586_v21 }
 0x6bb   :  { %2396 = vmatprep.subr.bf16.mxu1 %v2653_v15 }
 0x6be   :  { %2397 = vmatpush3.bf16.msra.mxu1 %v2587_v55  ;;  %v2591_v55 = vld [vmem:[%s2112_s17 + $0x8] sm:$0xff]  }
 0x6bf   :  { %2398 = vmatprep.subr.bf16.mxu1 %v2653_v15 }
 0x6c2   :  { %2399 = vmatpush3.bf16.msra.mxu1 %v2588_v63 }
 0x6c3   :  { %2400 = vmatprep.subr.bf16.mxu1 %v2653_v15 }
 0x6c6   :  { %2401 = vmatpush3.bf16.msra.mxu1 %v2589_v5 }
 0x78c   :  { %v834_v30 = vpop.f32.mrb[20].mxu1 }
 0x78d   :  { %v835_v33 = vadd.f32 %v2155_v29, %v834_v30  ;;  %v2384_v35 = vpop.f32.mrb[21].mxu1 }
 0x78e   :  { %v837_v36 = vpop.f32.mrb[22].mxu1 }
 0x78f   :  { %v838_v37 = vadd.f32 %v2155_v29, %v837_v36  ;;  %v2385_v39 = vpop.f32.mrb[23].mxu1  ;;  %v841_v40 = vadd.f32 %v835_v33, %v2716_v31 }
 0x791   :  { %v845_v41 = vsel %vm151_vm0, %v841_v40, 0.0  ;;  %v842_v42 = vadd.f32 %v838_v37, %v2718_v32  ;;  %v2584_v32 = vld [vmem:[%s2106_s21] sm:$0xff]   ;;  %s2110_s21 = sld [smem:[%s3098_s0 + %s2673_s18]]   ;;  %s2688_s18 = smov 32  }
 0x792   :  { %846 = vadd.xlane.f32.xlu0 %v845_v41  ;;  %2387 = vmatpush3.bf16.msra.mxu0 %v2584_v32 }
 0x793   :  { %v848_v43 = vsel %vm151_vm0, %v842_v42, 0.0  ;;  %2388 = vmatprep.subr.bf16.mxu0 %v2653_v15 }
 0x794   :  { %849 = vadd.xlane.f32.xlu1 %v848_v43 }
 0x796   :  { %2389 = vmatpush3.bf16.msra.mxu0 %v2585_v1 }
 0x797   :  { %2406 = vmatprep.subr.bf16.mxu0 %v2653_v15 }
 0x81f   :  { %v847_v44 = vpop.xlane.xlu0 %846 }
 0x820   :  { %v851_v51 = vmul.f32 0.03125, %v847_v44 }
 0x821   :  { %v850_v53 = vpop.xlane.xlu1 %849 }
 0x822   :  { %v853_v56 = vsub.f32 %v841_v40, %v851_v51  ;;  %v852_v57 = vmul.f32 0.03125, %v850_v53 }
 0x824   :  { %v854_v59 = vsub.f32 %v842_v42, %v852_v57  ;;  %v855_v60 = vmul.f32 %v853_v56, %v853_v56 }
 0x826   :  { %v857_v61 = vsel %vm151_vm0, %v855_v60, 0.0  ;;  %v856_v62 = vmul.f32 %v854_v59, %v854_v59 }
 0x827   :  { %858 = vadd.xlane.f32.xlu0 %v857_v61 }
 0x828   :  { %v860_v31 = vsel %vm151_vm0, %v856_v62, 0.0  ;;  %v2165_v62 = vld [vmem:[%s2109_s13] ss:$0 sm:$0xff]  ;;  %s2123_s13 = sld [smem:[%s3098_s0 + %s2686_s10]]  }
 0x829   :  { %861 = vadd.xlane.f32.xlu1 %v860_v31 }
 0x8b4   :  { %v859_v2 = vpop.xlane.xlu0 %858 }
 0x8b5   :  { %v863_v6 = vmul.f32 0.03125, %v859_v2 }
 0x8b6   :  { %v862_v8 = vpop.xlane.xlu1 %861 }
 0x8b7   :  { %v865_v9 = vadd.f32 1e-12, %v863_v6  ;;  %v864_v10 = vmul.f32 0.03125, %v862_v8 }
 0x8b9   :  { %2616 = vrsqrt.f32 %v865_v9  ;;  %v866_v11 = vadd.f32 1e-12, %v864_v10 }
 0x8bb   :  { %2618 = vrsqrt.f32 %v866_v11 }
 0x8c3   :  { %v2617_v12 = vpop.eup %2616 }
 0x8c4   :  { %v869_v14 = vmul.f32 %v2617_v12, %v853_v56 }
 0x8c5   :  { %v2619_v16 = vpop.eup %2618 }
 0x8c6   :  { %v877_v58 = vmul.f32 %v2159_v13, %v869_v14  ;;  %v870_v3 = vmul.f32 %v2619_v16, %v854_v59 }
 0x8c8   :  { %v878_v17 = vmul.f32 %v2159_v13, %v870_v3  ;;  %v885_v18 = vadd.f32 %v2160_v7, %v877_v58 }
 0x8ca   :  { %v886_v19 = vadd.f32 %v2160_v7, %v878_v17 }
 0x8cc   :  { %v887_v20 = vpack.c.bf16 %v886_v19, %v885_v18 }
 0x8ce   :  { %2391 = vmatmul.mubr.msk.bf16.vlgmr.msra.gmra.mrb[20].mxu0 %vm151_vm0, %v887_v20 }
 0x8cf   :  { %2410 = vmatprep.mubr.msk.bf16.mxu0 %vm2654_vm1, %v2653_v15 }
 0x9a1   :  { %v948_v23 = vpop.f32.mrb[20].mxu0 }
 0x9a2   :  { %v949_v24 = vadd.f32 %v2161_v22, %v948_v23  ;;  %v2392_v25 = vpop.f32.mrb[21].mxu0 }
 0x9a3   :  { %v951_v26 = vpop.f32.mrb[22].mxu0 }
 0x9a4   :  { %v957_v27 = vmul.f32 0.044715, %v949_v24  ;;  %v952_v28 = vadd.f32 %v2161_v22, %v951_v26  ;;  %v2393_v29 = vpop.f32.mrb[23].mxu0  ;;  %v955_v53 = vmul.f32 0.5, %v949_v24 }
 0x9a6   :  { %v959_v30 = vmul.f32 %v957_v27, %v949_v24  ;;  %v958_v33 = vmul.f32 0.044715, %v952_v28  ;;  %v956_v56 = vmul.f32 0.5, %v952_v28  ;;  %v2171_v27 = vld [vmem:[%s2110_s21] ss:$0 sm:$0xff]  ;;  %s2125_s21 = sld [smem:[%s3098_s0 + %s2688_s18]]  }
 0x9a8   :  { %v961_v35 = vmul.f32 %v959_v30, %v949_v24  ;;  %v960_v36 = vmul.f32 %v958_v33, %v952_v28 }
 0x9aa   :  { %v963_v37 = vadd.f32 %v961_v35, %v949_v24  ;;  %v962_v39 = vmul.f32 %v960_v36, %v952_v28  ;;  %v2172_v35 = vld [vmem:[%s2111_s25] ss:$0 sm:$0xff]  ;;  %s2127_s25 = sld [smem:[%s3098_s0 + %s2689_s22]]  }
 0x9ac   :  { %v965_v40 = vmul.f32 0.7978846, %v963_v37  ;;  %v964_v41 = vadd.f32 %v962_v39, %v952_v28 }
 0x9ae   :  { %2620 = vtanh.f32 %v965_v40  ;;  %v966_v42 = vmul.f32 0.7978846, %v964_v41  ;;  %v2173_v41 = vld [vmem:[%s2113_s1] ss:$0 sm:$0xff]  ;;  %s2128_s1 = sld [smem:[%s3098_s0 + %s2690_s28]]  }
 0x9b0   :  { %2622 = vtanh.f32 %v966_v42 }
 0x9b8   :  { %v2621_v43 = vpop.eup %2620 }
 0x9b9   :  { %v969_v44 = vadd.f32 1.0, %v2621_v43 }
 0x9ba   :  { %v2623_v51 = vpop.eup %2622 }
 0x9bb   :  { %v970_v57 = vadd.f32 1.0, %v2623_v51  ;;  %v971_v59 = vmul.f32 %v969_v44, %v955_v53 }
 0x9bd   :  { %v972_v60 = vmul.f32 %v970_v57, %v956_v56 }
 0x9bf   :  { %v973_v61 = vpack.c.bf16 %v972_v60, %v971_v59 }
 0x9c1   :  { %2403 = vmatmul.mubr.msk.bf16.vlgmr.msra.gmra.mrb[24].mxu1 %vm1013_vm3, %v973_v61 }
 0x9c2   :  { %2426 = vmatprep.mubr.msk.bf16.mxu1 %vm308_vm2, %v2732_v34 }
 0xa94   :  { %v1051_v31 = vpop.f32.mrb[24].mxu1 }
 0xa95   :  { %v1052_v32 = vadd.f32 %v2165_v62, %v1051_v31  ;;  %v2404_v1 = vpop.f32.mrb[25].mxu1 }
 0xa96   :  { %v1054_v2 = vpop.f32.mrb[26].mxu1 }
 0xa97   :  { %v1055_v6 = vadd.f32 %v2165_v62, %v1054_v2  ;;  %v2405_v8 = vpop.f32.mrb[27].mxu1  ;;  %v1058_v9 = vadd.f32 %v1052_v32, %v885_v18 }
 0xa99   :  { %v1062_v10 = vsel %vm151_vm0, %v1058_v9, 0.0  ;;  %v1059_v11 = vadd.f32 %v1055_v6, %v886_v19  ;;  %v2590_v19 = vld [vmem:[%s2112_s17] sm:$0xff]   ;;  %s2126_s17 = sld [smem:[%s3098_s0 + %s2687_s14]]  }
 0xa9a   :  { %1063 = vadd.xlane.f32.xlu0 %v1062_v10  ;;  %2407 = vmatpush3.bf16.msra.mxu0 %v2590_v19 }
 0xa9b   :  { %v1065_v12 = vsel %vm151_vm0, %v1059_v11, 0.0  ;;  %2408 = vmatprep.subr.bf16.mxu0 %v2653_v15 }
 0xa9c   :  { %1066 = vadd.xlane.f32.xlu1 %v1065_v12 }
 0xa9e   :  { %2409 = vmatpush3.bf16.msra.mxu0 %v2591_v55 }
 0xb27   :  { %v1064_v13 = vpop.xlane.xlu0 %1063 }
 0xb28   :  { %v1068_v14 = vmul.f32 0.03125, %v1064_v13 }
 0xb29   :  { %v1067_v16 = vpop.xlane.xlu1 %1066 }
 0xb2a   :  { %v1070_v58 = vsub.f32 %v1058_v9, %v1068_v14  ;;  %v1069_v3 = vmul.f32 0.03125, %v1067_v16 }
 0xb2c   :  { %v1071_v7 = vsub.f32 %v1059_v11, %v1069_v3  ;;  %v1072_v17 = vmul.f32 %v1070_v58, %v1070_v58 }
 0xb2e   :  { %v1074_v20 = vsel %vm151_vm0, %v1072_v17, 0.0  ;;  %v1073_v21 = vmul.f32 %v1071_v7, %v1071_v7 }
 0xb2f   :  { %1075 = vadd.xlane.f32.xlu0 %v1074_v20 }
 0xb30   :  { %v1077_v18 = vsel %vm151_vm0, %v1073_v21, 0.0 }
 0xb31   :  { %1078 = vadd.xlane.f32.xlu1 %v1077_v18 }
 0xbbc   :  { %v1076_v63 = vpop.xlane.xlu0 %1075 }
 0xbbd   :  { %v1080_v5 = vmul.f32 0.03125, %v1076_v63 }
 0xbbe   :  { %v1079_v22 = vpop.xlane.xlu1 %1078 }
 0xbbf   :  { %v1082_v23 = vadd.f32 1e-12, %v1080_v5  ;;  %v1081_v24 = vmul.f32 0.03125, %v1079_v22 }
 0xbc1   :  { %2624 = vrsqrt.f32 %v1082_v23  ;;  %v1083_v25 = vadd.f32 1e-12, %v1081_v24 }
 0xbc3   :  { %2626 = vrsqrt.f32 %v1083_v25 }
 0xbcb   :  { %v2625_v26 = vpop.eup %2624 }
 0xbcc   :  { %v1086_v28 = vmul.f32 %v2625_v26, %v1070_v58 }
 0xbcd   :  { %v2627_v29 = vpop.eup %2626 }
 0xbce   :  { %v1094_v30 = vmul.f32 %v2171_v27, %v1086_v28  ;;  %v1087_v33 = vmul.f32 %v2627_v29, %v1071_v7 }
 0xbd0   :  { %v1095_v36 = vmul.f32 %v2171_v27, %v1087_v33  ;;  %v2930_v37 = vadd.f32 %v2172_v35, %v1094_v30 }
 0xbd2   :  { %v2932_v39 = vadd.f32 %v2172_v35, %v1095_v36 }
 0xbd4   :  { %v1104_v40 = vpack.c.bf16 %v2932_v39, %v2930_v37 }
 0xbd6   :  { %2411 = vmatmul.mubr.msk.bf16.vlgmr.msra.gmra.mrb[24].mxu0 %vm151_vm0, %v1104_v40 }
 0xbd7   :  { %2416 = vmatprep.mubr.msk.bf16.mxu0 %vm308_vm2, %v2732_v34 }
 0xca9   :  { %v1165_v42 = vpop.f32.mrb[24].mxu0 }
 0xcaa   :  { %v2412_v43 = vpop.f32.mrb[25].mxu0  ;;  %v2942_v51 = vadd.f32 %v2173_v41, %v1165_v42 }
 0xcab   :  { %v1168_v44 = vpop.f32.mrb[26].mxu0 }
 0xcac   :  { %v2944_v53 = vadd.f32 %v2173_v41, %v1168_v44  ;;  %v2413_v56 = vpop.f32.mrb[27].mxu0  ;;  %v1172_v25 = vpack.c.bf16 %v2942_v51, %v2942_v51 }
 0xcae   :  { %v1174_v57 = vpack.c.bf16 %v2944_v53, %v2942_v51  ;;  %v1173_v27 = vpack.c.bf16 %v2944_v53, %v2944_v53 }
 0xcb0   :  { %1256 = vrot.lane.b32.xlu1 %v1174_v57, %s2659_s26  ;;  %1176 = vrot.lane.b32.xlu0 %v1174_v57, %s2660_s27  ;;  %s2676_s26 = smov 21   ;;  %s2121_s27 = sld [smem:[%s3098_s0 + %s2683_s30]]  }
 0xcb1   :  { %s2114_s3 = sld [smem:[%s3098_s0 + %s2676_s26]]  }
 0xd22   :  { %v1257_v34 = vpop.permute.xlu1 %1256  ;;  %v1177_v59 = vpop.permute.xlu0 %1176 }
 0xd23   :  { %2414 = vmatprep.subr.bf16.mxu0 %v1177_v59  ;;  %2424 = vmatprep.subr.bf16.mxu1 %v1257_v34 }
 0xd24   :  { %2415 = vmatpush3.bf16.msra.mxu0 %v1177_v59  ;;  %2425 = vmatpush3.bf16.msra.mxu1 %v1257_v34 }
 0xd25   :  { %2434 = vmatprep.subr.bf16.mxu0 %v2653_v15  ;;  %2442 = vmatprep.subr.bf16.mxu1 %v2653_v15 }
 0xd27   :  { %2417 = vmatmul.mubr.msk.bf16.vlgmr.msra.gmra.mrb[28].mxu0 %vm308_vm2, %v2747_v45  ;;  %2427 = vmatmul.mubr.msk.bf16.vlgmr.msra.gmra.mrb[28].mxu1 %vm308_vm2, %v2747_v45 }
 0xd28   :  { %2420 = vmatprep.mubr.msk.bf16.mxu0 %vm308_vm2, %v2750_v46  ;;  %2430 = vmatprep.mubr.msk.bf16.mxu1 %vm308_vm2, %v2750_v46 }
 0xd2f   :  { %2421 = vmatmul.mubr.msk.bf16.gmra.mrb[32].mxu0 %vm308_vm2, %v2763_v47  ;;  %2431 = vmatmul.mubr.msk.bf16.gmra.mrb[32].mxu1 %vm308_vm2, %v2763_v47 }
 0xd30   :  { %2438 = vmatprep.mubr.msk.bf16.mxu0 %vm2654_vm1, %v2653_v15  ;;  %2446 = vmatprep.mubr.msk.bf16.mxu1 %vm2654_vm1, %v2653_v15 }
 0xdfa   :  { %v2418_v60 = vpop.f32.mrb[28].mxu0  ;;  %v2428_v45 = vpop.f32.mrb[28].mxu1 }
 0xdfb   :  { %v1213_v61 = vpop.f32.mrb[29].mxu0  ;;  %v1326_v62 = vmul.f32 %v2428_v45, %v2776_v48  ;;  %v1293_v31 = vpop.f32.mrb[29].mxu1  ;;  %v1246_v2 = vmul.f32 %v2418_v60, %v2776_v48 }
 0xdfc   :  { %v2419_v32 = vpop.f32.mrb[30].mxu0  ;;  %v1324_v46 = vmul.f32 %v1293_v31, %v2780_v52  ;;  %v2429_v1 = vpop.f32.mrb[30].mxu1  ;;  %v1244_v10 = vmul.f32 %v1213_v61, %v2780_v52 }
 0xdfd   :  { %v1247_v47 = vmul.f32 %v2419_v32, %v2778_v50  ;;  %v1216_v6 = vpop.f32.mrb[31].mxu0  ;;  %v1327_v8 = vmul.f32 %v2429_v1, %v2778_v50  ;;  %v1296_v9 = vpop.f32.mrb[31].mxu1 }
 0xdfe   :  { %v1245_v11 = vmul.f32 %v1216_v6, %v2782_v54  ;;  %v1325_v12 = vmul.f32 %v1296_v9, %v2782_v54  ;;  %v2592_v9 = vld [vmem:[%s2114_s3] sm:$0xff]  }
 0xdff   :  { %v1253_v13 = vpack.c.bf16 %v1247_v47, %v1246_v2  ;;  %v1333_v14 = vpack.c.bf16 %v1327_v8, %v1326_v62 }
 0xe00   :  { %v1252_v16 = vpack.c.bf16 %v1245_v11, %v1244_v10  ;;  %v1332_v58 = vpack.c.bf16 %v1325_v12, %v1324_v46  ;;  %v2593_v11 = vld [vmem:[%s2114_s3 + $0x8] sm:$0xff]  }
 0xe01   :  { %v1343_v23 = vsel %vm151_vm0, %v1253_v13, 0 }
 0xe02   :  { %v2422_v3 = vpop.f32.mrb[32].mxu0  ;;  %v1340_v7 = vsel %vm151_vm0, %v1252_v16, 0 }
 0xe03   :  { %v1229_v17 = vpop.f32.mrb[33].mxu0  ;;  %2435 = vmatpush3.bf16.xpose.msra.mxu0 %v1340_v7  ;;  %v1250_v21 = vmul.f32 %v2422_v3, %v2776_v48 }
 0xe04   :  { %v2423_v20 = vpop.f32.mrb[34].mxu0  ;;  %2436 = vmatprep.subr.bf16.mxu0 %v2653_v15  ;;  %v1248_v55 = vmul.f32 %v1229_v17, %v2780_v52 }
 0xe05   :  { %v1251_v18 = vmul.f32 %v2423_v20, %v2778_v50  ;;  %v1232_v19 = vpop.f32.mrb[35].mxu0 }
 0xe06   :  { %v1249_v63 = vmul.f32 %v1232_v19, %v2782_v54 }
 0xe07   :  { %v1255_v5 = vpack.c.bf16 %v1251_v18, %v1250_v21  ;;  %v2191_v21 = vld [vmem:[%s2115_s7] ss:$0 sm:$0xff] }
 0xe08   :  { %v1254_v22 = vpack.c.bf16 %v1249_v63, %v1248_v55 }
 0xe09   :  { %v1392_v26 = vsel %vm151_vm0, %v1255_v5, 0 }
 0xe0a   :  { %v1389_v24 = vsel %vm151_vm0, %v1254_v22, 0 }
 0xe0b   :  { %2437 = vmatpush3.bf16.xpose.msra.mxu0 %v1343_v23  ;;  %2443 = vmatpush3.bf16.xpose.msra.mxu1 %v1389_v24 }
 0xe0c   :  { %2444 = vmatprep.subr.bf16.mxu1 %v2653_v15  ;;  %2530 = vmatprep.subr.bf16.mxu0 %v2843_v0 }
 0xe12   :  { %2439 = vmatmul.mubr.msk.bf16.vlgmr.msra.gmra.mrb[36].mxu0 %vm151_vm0, %v1172_v25 }
 0xe13   :  { %2445 = vmatpush3.bf16.xpose.msra.mxu1 %v1392_v26  ;;  %2532 = vmatpush3.bf16.msra.mxu0 %v2843_v0  ;;  %v2432_v0 = vpop.f32.mrb[32].mxu1 }
 0xe14   :  { %2461 = vmatprep.subr.bf16.mxu1 %v2653_v15  ;;  %2534 = vmatprep.subr.bf16.mxu0 %v2847_v4  ;;  %v1309_v28 = vpop.f32.mrb[33].mxu1 }
 0xe15   :  { %v2433_v29 = vpop.f32.mrb[34].mxu1  ;;  %v1328_v33 = vmul.f32 %v1309_v28, %v2780_v52 }
 0xe16   :  { %v1312_v30 = vpop.f32.mrb[35].mxu1  ;;  %v1331_v35 = vmul.f32 %v2433_v29, %v2778_v50 }
 0xe17   :  { %2536 = vmatpush3.bf16.msra.mxu0 %v2847_v4  ;;  %v1330_v4 = vmul.f32 %v2432_v0, %v2776_v48  ;;  %v1329_v36 = vmul.f32 %v1312_v30, %v2782_v54 }
 0xe18   :  { %2469 = vmatprep.subr.bf16.mxu0 %v2653_v15 }
 0xe19   :  { %v1335_v40 = vpack.c.bf16 %v1331_v35, %v1330_v4  ;;  %v1334_v41 = vpack.c.bf16 %v1329_v36, %v1328_v33 }
 0xe1a   :  { %2447 = vmatmul.mubr.msk.bf16.vlgmr.msra.gmra.mrb[36].mxu1 %vm151_vm0, %v1173_v27 }
 0xe1b   :  { %2462 = vmatpush3.bf16.msra.mxu1 %v1332_v58  ;;  %2465 = vmatprep.mubr.msk.bf16.mxu1 %vm2654_vm1, %v2653_v15 }
 0xe1c   :  { %2463 = vmatprep.subr.bf16.mxu1 %v2653_v15 }
 0xe1f   :  { %2464 = vmatpush3.bf16.msra.mxu1 %v1333_v14 }
 0xe20   :  { %2477 = vmatprep.subr.bf16.mxu1 %v2653_v15 }
 0xee5   :  { %v1379_v42 = vpop.f32.mrb[36].mxu0 }
 0xee6   :  { %v1380_v43 = vadd.f32 %v2832_v38, %v1379_v42  ;;  %v2440_v44 = vpop.f32.mrb[37].mxu0 }
 0xee7   :  { %v1382_v51 = vpop.f32.mrb[38].mxu0 }
 0xee8   :  { %v2441_v53 = vpop.f32.mrb[39].mxu0  ;;  %v1434_v56 = vsel %vm151_vm0, %v1380_v43, -inf }
 0xee9   :  { %1435 = vmax.xlane.f32.xlu1 %v1434_v56 }
 0xeed   :  { %v1428_v57 = vpop.f32.mrb[36].mxu1 }
 0xeee   :  { %v1429_v48 = vadd.f32 %v2836_v49, %v1428_v57  ;;  %v2448_v34 = vpop.f32.mrb[37].mxu1  ;;  %v2195_v57 = vld [vmem:[%s2116_s15] ss:$0 sm:$0xff] }
 0xeef   :  { %v1431_v52 = vpop.f32.mrb[38].mxu1 }
 0xef0   :  { %v2449_v59 = vpop.f32.mrb[39].mxu1  ;;  %v1437_v50 = vsel %vm151_vm0, %v1429_v48, -inf }
 0xef1   :  { %1438 = vmax.xlane.f32.xlu0 %v1437_v50  ;;  %v2196_v50 = vld [vmem:[%s2117_s19] ss:$0 sm:$0xff] }
 0xf76   :  { %v1436_v54 = vpop.xlane.xlu1 %1435 }
 0xf77   :  { %v1440_v60 = vsub.f32 %v1380_v43, %v1436_v54 }
 0xf79   :  { %v1442_v45 = vmul.f32 1.442695, %v1440_v60 }
 0xf7b   :  { %2628 = vpow2.f32 %v1442_v45 }
 0xf7e   :  { %v1439_v38 = vpop.xlane.xlu0 %1438 }
 0xf7f   :  { %v1441_v61 = vsub.f32 %v1429_v48, %v1439_v38 }
 0xf81   :  { %v1444_v62 = vmul.f32 1.442695, %v1441_v61  ;;  %v2596_v61 = vld [vmem:[%s2120_s23] sm:$0xff]  }
 0xf83   :  { %2630 = vpow2.f32 %v1444_v62  ;;  %v2597_v62 = vld [vmem:[%s2120_s23 + $0x8] sm:$0xff]  }
 0xf85   :  { %v2629_v31 = vpop.eup %2628 }
 0xf86   :  { %2458 = vmatprep.mubr.msk.f32.mxu0 %vm151_vm0, %v2629_v31 }
 0xf8d   :  { %v2631_v32 = vpop.eup %2630 }
 0xf8e   :  { %2459 = vmatmul.mubr.msk.f32.vlgmr.msra.gmra.mrb[40].mxu0 %vm151_vm0, %v2631_v32 }
 0xf8f   :  { %2470 = vmatpush3.bf16.msra.mxu0 %v1334_v41  ;;  %2473 = vmatprep.mubr.msk.bf16.mxu0 %vm2654_vm1, %v2653_v15 }
 0xf90   :  { %2471 = vmatprep.subr.bf16.mxu0 %v2653_v15 }
 0xf93   :  { %2472 = vmatpush3.bf16.msra.mxu0 %v1335_v40  ;;  %v2595_v40 = vld [vmem:[%s2118_s11 + $0x8] sm:$0xff]  }
 0xf94   :  { %2485 = vmatprep.subr.bf16.mxu0 %v2653_v15 }
0x1061   :  { %v2460_v49 = vpop.f32.mrb[40].mxu0 }
0x1062   :  { %2632 = vrcp.f32 %v2460_v49  ;;  %v1518_v46 = vpop.f32.mrb[41].mxu0  ;;  %v2197_v49 = vld [vmem:[%s2119_s29] ss:$0 sm:$0xff] }
0x1063   :  { %2634 = vrcp.f32 %v1518_v46 }
0x106c   :  { %v2633_v1 = vpop.eup %2632 }
0x106d   :  { %v2635_v2 = vpop.eup %2634  ;;  %v1530_v47 = vmul.f32 %v2633_v1, %v2631_v32  ;;  %v2599_v32 = vld [vmem:[%s2120_s23 + $0x18] sm:$0xff]  }
0x106e   :  { %v1529_v6 = vmul.f32 %v2635_v2, %v2629_v31  ;;  %v2598_v31 = vld [vmem:[%s2120_s23 + $0x10] sm:$0xff]  }
0x106f   :  { %v1532_v8 = vpack.c.bf16 %v1530_v47, %v1530_v47 }
0x1070   :  { %v1531_v10 = vpack.c.bf16 %v1529_v6, %v1529_v6 }
0x1071   :  { %2474 = vmatmul.mubr.msk.bf16.vlgmr.msra.gmra.mrb[44].mxu0 %vm151_vm0, %v1532_v8 }
0x1072   :  { %2466 = vmatmul.mubr.msk.bf16.vlgmr.msra.gmra.mrb[40].mxu1 %vm151_vm0, %v1531_v10  ;;  %2489 = vmatprep.mubr.msk.bf16.mxu0 %vm2654_vm1, %v2653_v15 }
0x1073   :  { %2478 = vmatpush3.bf16.msra.mxu1 %v2592_v9  ;;  %2481 = vmatprep.mubr.msk.bf16.mxu1 %vm2654_vm1, %v2653_v15 }
0x1074   :  { %2479 = vmatprep.subr.bf16.mxu1 %v2653_v15 }
0x1077   :  { %2480 = vmatpush3.bf16.msra.mxu1 %v2593_v11 }
0x1078   :  { %2493 = vmatprep.subr.bf16.mxu1 %v2653_v15 }
0x1144   :  { %v1613_v12 = vpop.f32.mrb[44].mxu0 }
0x1145   :  { %v1570_v13 = vpop.f32.mrb[40].mxu1  ;;  %v2475_v14 = vpop.f32.mrb[45].mxu0 }
0x1146   :  { %v1619_v16 = vpack.c.bf16 %v1613_v12, %v1570_v13  ;;  %v2467_v58 = vpop.f32.mrb[41].mxu1  ;;  %v1616_v3 = vpop.f32.mrb[46].mxu0 }
0x1147   :  { %v1573_v7 = vpop.f32.mrb[42].mxu1  ;;  %v2476_v17 = vpop.f32.mrb[47].mxu0 }
0x1148   :  { %v2468_v20 = vpop.f32.mrb[43].mxu1  ;;  %2482 = vmatmul.mubr.msk.bf16.vlgmr.msra.gmra.mrb[44].mxu1 %vm151_vm0, %v1619_v16 }
0x1149   :  { %2501 = vmatprep.mubr.msk.bf16.mxu1 %vm2654_vm1, %v2653_v15  ;;  %2494 = vmatpush3.bf16.msra.mxu1 %v2596_v61 }
0x114a   :  { %2495 = vmatprep.subr.bf16.mxu1 %v2653_v15 }
0x114d   :  { %2496 = vmatpush3.bf16.msra.mxu1 %v2597_v62 }
0x114e   :  { %2497 = vmatprep.subr.bf16.mxu1 %v2653_v15 }
0x1151   :  { %2498 = vmatpush3.bf16.msra.mxu1 %v2598_v31  ;;  %v2208_v31 = vld [vmem:[%s2123_s13] ss:$0 sm:$0xff] }
0x1152   :  { %2499 = vmatprep.subr.bf16.mxu1 %v2653_v15 }
0x1155   :  { %2500 = vmatpush3.bf16.msra.mxu1 %v2599_v32 }
0x121b   :  { %v1680_v18 = vpop.f32.mrb[44].mxu1 }
0x121c   :  { %v1681_v19 = vadd.f32 %v2191_v21, %v1680_v18  ;;  %v2483_v55 = vpop.f32.mrb[45].mxu1 }
0x121d   :  { %v1683_v63 = vpop.f32.mrb[46].mxu1 }
0x121e   :  { %v1684_v5 = vadd.f32 %v2191_v21, %v1683_v63  ;;  %v2484_v22 = vpop.f32.mrb[47].mxu1  ;;  %v1687_v23 = vadd.f32 %v1681_v19, %v2930_v37 }
0x1220   :  { %v1691_v24 = vsel %vm151_vm0, %v1687_v23, 0.0  ;;  %v1688_v25 = vadd.f32 %v1684_v5, %v2932_v39  ;;  %v2594_v39 = vld [vmem:[%s2118_s11] sm:$0xff]  }
0x1221   :  { %1692 = vadd.xlane.f32.xlu0 %v1691_v24  ;;  %2486 = vmatpush3.bf16.msra.mxu0 %v2594_v39 }
0x1222   :  { %v1694_v26 = vsel %vm151_vm0, %v1688_v25, 0.0  ;;  %2487 = vmatprep.subr.bf16.mxu0 %v2653_v15 }
0x1223   :  { %1695 = vadd.xlane.f32.xlu1 %v1694_v26 }
0x1225   :  { %2488 = vmatpush3.bf16.msra.mxu0 %v2595_v40 }
0x1226   :  { %2505 = vmatprep.subr.bf16.mxu0 %v2653_v15 }
0x12ae   :  { %v1693_v27 = vpop.xlane.xlu0 %1692 }
0x12af   :  { %v1697_v0 = vmul.f32 0.03125, %v1693_v27 }
0x12b0   :  { %v1696_v28 = vpop.xlane.xlu1 %1695 }
0x12b1   :  { %v1699_v29 = vsub.f32 %v1687_v23, %v1697_v0  ;;  %v1698_v4 = vmul.f32 0.03125, %v1696_v28  ;;  %v2201_v23 = vld [vmem:[%s2121_s27] ss:$0 sm:$0xff] }
0x12b3   :  { %v1700_v30 = vsub.f32 %v1688_v25, %v1698_v4  ;;  %v1701_v33 = vmul.f32 %v1699_v29, %v1699_v29 }
0x12b5   :  { %v1703_v35 = vsel %vm151_vm0, %v1701_v33, 0.0  ;;  %v1702_v36 = vmul.f32 %v1700_v30, %v1700_v30 }
0x12b6   :  { %1704 = vadd.xlane.f32.xlu0 %v1703_v35 }
0x12b7   :  { %v1706_v37 = vsel %vm151_vm0, %v1702_v36, 0.0 }
0x12b8   :  { %1707 = vadd.xlane.f32.xlu1 %v1706_v37 }
0x1343   :  { %v1705_v41 = vpop.xlane.xlu0 %1704 }
0x1344   :  { %v1709_v42 = vmul.f32 0.03125, %v1705_v41 }
0x1345   :  { %v1708_v43 = vpop.xlane.xlu1 %1707 }
0x1346   :  { %v1711_v44 = vadd.f32 1e-12, %v1709_v42  ;;  %v1710_v51 = vmul.f32 0.03125, %v1708_v43 }
0x1348   :  { %2636 = vrsqrt.f32 %v1711_v44  ;;  %v1712_v53 = vadd.f32 1e-12, %v1710_v51 }
0x134a   :  { %2638 = vrsqrt.f32 %v1712_v53  ;;  %v2600_v53 = vld [vmem:[%s2124_s5] sm:$0xff]  }
0x1352   :  { %v2637_v56 = vpop.eup %2636 }
0x1353   :  { %v1715_v48 = vmul.f32 %v2637_v56, %v1699_v29  ;;  %v2601_v56 = vld [vmem:[%s2124_s5 + $0x8] sm:$0xff]  }
0x1354   :  { %v2639_v34 = vpop.eup %2638 }
0x1355   :  { %v1723_v52 = vmul.f32 %v2195_v57, %v1715_v48  ;;  %v1716_v59 = vmul.f32 %v2639_v34, %v1700_v30 }
0x1357   :  { %v1724_v54 = vmul.f32 %v2195_v57, %v1716_v59  ;;  %v1731_v60 = vadd.f32 %v2196_v50, %v1723_v52 }
0x1359   :  { %v1732_v45 = vadd.f32 %v2196_v50, %v1724_v54 }
0x135b   :  { %v1733_v38 = vpack.c.bf16 %v1732_v45, %v1731_v60 }
0x135d   :  { %2490 = vmatmul.mubr.msk.bf16.vlgmr.msra.gmra.mrb[48].mxu0 %vm151_vm0, %v1733_v38 }
0x135e   :  { %2509 = vmatprep.mubr.msk.bf16.mxu0 %vm2654_vm1, %v2653_v15  ;;  %2506 = vmatpush3.bf16.msra.mxu0 %v2600_v53 }
0x135f   :  { %2507 = vmatprep.subr.bf16.mxu0 %v2653_v15 }
0x1362   :  { %2508 = vmatpush3.bf16.msra.mxu0 %v2601_v56 }
0x1363   :  { %2513 = vmatprep.subr.bf16.mxu0 %v2653_v15 }
0x1430   :  { %v1794_v46 = vpop.f32.mrb[48].mxu0 }
0x1431   :  { %v1795_v1 = vadd.f32 %v2197_v49, %v1794_v46  ;;  %v2491_v2 = vpop.f32.mrb[49].mxu0 }
0x1432   :  { %v1797_v47 = vpop.f32.mrb[50].mxu0  ;;  %v2602_v2 = vld [vmem:[%s2126_s17] sm:$0xff]  }
0x1433   :  { %v1803_v6 = vmul.f32 0.044715, %v1795_v1  ;;  %v1798_v8 = vadd.f32 %v2197_v49, %v1797_v47  ;;  %v2492_v9 = vpop.f32.mrb[51].mxu0  ;;  %v1801_v18 = vmul.f32 0.5, %v1795_v1  ;;  %v2603_v47 = vld [vmem:[%s2126_s17 + $0x8] sm:$0xff]  }
0x1435   :  { %v1805_v10 = vmul.f32 %v1803_v6, %v1795_v1  ;;  %v1804_v11 = vmul.f32 0.044715, %v1798_v8  ;;  %v1802_v19 = vmul.f32 0.5, %v1798_v8  ;;  %v2209_v6 = vld [vmem:[%s2125_s21] ss:$0 sm:$0xff] }
0x1437   :  { %v1807_v12 = vmul.f32 %v1805_v10, %v1795_v1  ;;  %v1806_v13 = vmul.f32 %v1804_v11, %v1798_v8 }
0x1439   :  { %v1809_v14 = vadd.f32 %v1807_v12, %v1795_v1  ;;  %v1808_v16 = vmul.f32 %v1806_v13, %v1798_v8 }
0x143b   :  { %v1811_v58 = vmul.f32 0.7978846, %v1809_v14  ;;  %v1810_v3 = vadd.f32 %v1808_v16, %v1798_v8 }
0x143d   :  { %2640 = vtanh.f32 %v1811_v58  ;;  %v1812_v7 = vmul.f32 0.7978846, %v1810_v3 }
0x143f   :  { %2642 = vtanh.f32 %v1812_v7 }
0x1447   :  { %v2641_v17 = vpop.eup %2640 }
0x1448   :  { %v1815_v20 = vadd.f32 1.0, %v2641_v17 }
0x1449   :  { %v2643_v21 = vpop.eup %2642 }
0x144a   :  { %v1816_v55 = vadd.f32 1.0, %v2643_v21  ;;  %v1817_v63 = vmul.f32 %v1815_v20, %v1801_v18 }
0x144c   :  { %v1818_v5 = vmul.f32 %v1816_v55, %v1802_v19 }
0x144e   :  { %v1819_v22 = vpack.c.bf16 %v1818_v5, %v1817_v63 }
0x1450   :  { %2502 = vmatmul.mubr.msk.bf16.vlgmr.msra.gmra.mrb[48].mxu1 %vm1013_vm3, %v1819_v22 }
0x1523   :  { %v1896_v24 = vpop.f32.mrb[48].mxu1 }
0x1524   :  { %v1897_v25 = vadd.f32 %v2201_v23, %v1896_v24  ;;  %v2503_v26 = vpop.f32.mrb[49].mxu1 }
0x1525   :  { %v1899_v27 = vpop.f32.mrb[50].mxu1 }
0x1526   :  { %v1900_v0 = vadd.f32 %v2201_v23, %v1899_v27  ;;  %v2504_v28 = vpop.f32.mrb[51].mxu1  ;;  %v1903_v29 = vadd.f32 %v1897_v25, %v1731_v60  ;;  %v2207_v60 = vld [vmem:[%s2122_s9] ss:$0 sm:$0xff] }
0x1528   :  { %v1907_v4 = vsel %vm151_vm0, %v1903_v29, 0.0  ;;  %v1904_v30 = vadd.f32 %v1900_v0, %v1732_v45 }
0x1529   :  { %1908 = vadd.xlane.f32.xlu0 %v1907_v4 }
0x152a   :  { %v1910_v33 = vsel %vm151_vm0, %v1904_v30, 0.0 }
0x152b   :  { %1911 = vadd.xlane.f32.xlu1 %v1910_v33 }
0x15b6   :  { %v1909_v35 = vpop.xlane.xlu0 %1908 }
0x15b7   :  { %v1913_v36 = vmul.f32 0.03125, %v1909_v35 }
0x15b8   :  { %v1912_v37 = vpop.xlane.xlu1 %1911 }
0x15b9   :  { %v1915_v39 = vsub.f32 %v1903_v29, %v1913_v36  ;;  %v1914_v40 = vmul.f32 0.03125, %v1912_v37 }
0x15bb   :  { %v1916_v41 = vsub.f32 %v1904_v30, %v1914_v40  ;;  %v1917_v42 = vmul.f32 %v1915_v39, %v1915_v39 }
0x15bd   :  { %v1919_v43 = vsel %vm151_vm0, %v1917_v42, 0.0  ;;  %v1918_v44 = vmul.f32 %v1916_v41, %v1916_v41 }
0x15be   :  { %1920 = vadd.xlane.f32.xlu0 %v1919_v43 }
0x15bf   :  { %v1922_v51 = vsel %vm151_vm0, %v1918_v44, 0.0 }
0x15c0   :  { %1923 = vadd.xlane.f32.xlu1 %v1922_v51 }
0x164b   :  { %v1921_v57 = vpop.xlane.xlu0 %1920 }
0x164c   :  { %v1925_v48 = vmul.f32 0.03125, %v1921_v57 }
0x164d   :  { %v1924_v34 = vpop.xlane.xlu1 %1923 }
0x164e   :  { %v1927_v52 = vadd.f32 1e-12, %v1925_v48  ;;  %v1926_v59 = vmul.f32 0.03125, %v1924_v34 }
0x1650   :  { %2644 = vrsqrt.f32 %v1927_v52  ;;  %v1928_v50 = vadd.f32 1e-12, %v1926_v59 }
0x1652   :  { %2646 = vrsqrt.f32 %v1928_v50 }
0x165a   :  { %v2645_v54 = vpop.eup %2644 }
0x165b   :  { %v1931_v45 = vmul.f32 %v2645_v54, %v1915_v39 }
0x165c   :  { %v2647_v38 = vpop.eup %2646 }
0x165d   :  { %v1939_v61 = vmul.f32 %v2207_v60, %v1931_v45  ;;  %v1932_v62 = vmul.f32 %v2647_v38, %v1916_v41 }
0x165f   :  { %v1940_v32 = vmul.f32 %v2207_v60, %v1932_v62  ;;  %v1947_v49 = vadd.f32 %v2208_v31, %v1939_v61 }
0x1661   :  { %v1948_v46 = vadd.f32 %v2208_v31, %v1940_v32 }
0x1663   :  { %v1949_v1 = vpack.c.bf16 %v1948_v46, %v1947_v49 }
0x1665   :  { %2510 = vmatmul.mubr.msk.bf16.vlgmr.msra.gmra.mrb[52].mxu0 %vm151_vm0, %v1949_v1 }
0x1666   :  { %2517 = vmatprep.mubr.msk.bf16.mxu0 %vm2654_vm1, %v2653_v15  ;;  %2514 = vmatpush3.bf16.msra.mxu0 %v2602_v2 }
0x1667   :  { %2515 = vmatprep.subr.bf16.mxu0 %v2653_v15  ;;  %v2213_v15 = vld [vmem:[%s2127_s25] ss:$0 sm:$0xff] }
0x166a   :  { %2516 = vmatpush3.bf16.msra.mxu0 %v2603_v47 }
0x1738   :  { %v2010_v8 = vpop.f32.mrb[52].mxu0 }
0x1739   :  { %v2011_v9 = vadd.f32 %v2209_v6, %v2010_v8  ;;  %v2511_v10 = vpop.f32.mrb[53].mxu0 }
0x173a   :  { %v2013_v11 = vpop.f32.mrb[54].mxu0 }
0x173b   :  { %v2014_v12 = vadd.f32 %v2209_v6, %v2013_v11  ;;  %v2512_v13 = vpop.f32.mrb[55].mxu0  ;;  %2648 = vtanh.f32 %v2011_v9 }
0x173d   :  { %2650 = vtanh.f32 %v2014_v12 }
0x1745   :  { %v2649_v14 = vpop.eup %2648 }
0x1747   :  { %v2651_v16 = vpop.eup %2650 }
0x1748   :  { %v2019_v58 = vpack.c.bf16 %v2651_v16, %v2649_v14 }
0x174a   :  { %2518 = vmatmul.mubr.msk.bf16.vlgmr.msra.gmra.mrb[56].mxu0 %vm151_vm0, %v2019_v58 }
0x181d   :  { %v2080_v3 = vpop.f32.mrb[56].mxu0 }
0x181e   :  { %v2081_v7 = vadd.f32 %v2213_v15, %v2080_v3  ;;  %v2519_v17 = vpop.f32.mrb[57].mxu0 }
0x181f   :  { %v2083_v20 = vpop.f32.mrb[58].mxu0 }
0x1820   :  { %2088 = vst.msk [vmem:[%s2128_s1] sm:$0xff] %vm2087_vm4, %v2081_v7  ;;  %v2084_v21 = vadd.f32 %v2213_v15, %v2083_v20  ;;  %v2520_v18 = vpop.f32.mrb[59].mxu0 }
0x1822   :  { %2089 = vst.msk [vmem:[%s2128_s1 + $0x8] sm:$0xff] %vm2087_vm4, %v2084_v21 }

</bundles_post_ra>
